<compile_context>
chip_gen: v7x
topology: tpu7x:2x2x1
jax: 0.10.0
libtpu: 0.0.40
codegen_flags: <defaults>
</compile_context>

<pallas_src>
import functools

import jax
import jax.numpy as jnp
from jax.experimental import pallas as pl
from jax.experimental.pallas import tpu as pltpu


HEAD_PAD = 128  # lane-dense padding for the 2-way classification head


# ----------------------------- kernel -------------------------------------- #

def _layernorm(x, g, b, eps=1e-5):
    mu = jnp.mean(x, axis=-1, keepdims=True)
    var = jnp.mean((x - mu) ** 2, axis=-1, keepdims=True)
    return (x - mu) * jax.lax.rsqrt(var + eps) * g + b


def _encoder_kernel(head_count,
                    x_ref, bias_ref,
                    ln1g_ref, ln1b_ref,
                    wq_ref, bq_ref, wk_ref, bk_ref, wv_ref, bv_ref,
                    wo_ref, bo_ref,
                    ln2g_ref, ln2b_ref, w1_ref, b1_ref, w2_ref, b2_ref,
                    lnfg_ref, lnfb_ref, wh_ref, bh_ref,
                    logits_ref, x_acc):
    """Grid = (batch, layer); layer iterates fastest (sequential, 'arbitrary').

    x_acc (VMEM scratch, (T, C) f32) holds this batch element's residual
    stream across all layers; the final LayerNorm + classification head run
    on the last layer step.
    """
    layer = pl.program_id(1)
    H = head_count
    T, C = x_acc.shape

    @pl.when(layer == 0)
    def _():
        x_acc[...] = x_ref[...]

    x = x_acc[...]                                            # (T, C) f32

    # ---------------- multi-head self attention ---------------------------- #
    h1 = _layernorm(x, ln1g_ref[...], ln1b_ref[...])
    hb = jnp.broadcast_to(h1.astype(jnp.bfloat16)[None], (H, T, C))

    # head-batched projections (no lane slicing / concat to split heads);
    # 1/sqrt(hs) is folded into wq/bq at init time.
    qh = jnp.einsum('htc,hcf->htf', hb, wq_ref[...],
                    preferred_element_type=jnp.float32) + bq_ref[...]   # (H,T,hs)
    kh = jnp.einsum('htc,hcf->htf', hb, wk_ref[...],
                    preferred_element_type=jnp.float32) + bk_ref[...]
    vh = jnp.einsum('htc,hcf->htf', hb, wv_ref[...],
                    preferred_element_type=jnp.float32) + bv_ref[...]

    s = jnp.einsum('hqd,hkd->hqk', qh.astype(jnp.bfloat16),
                   kh.astype(jnp.bfloat16),
                   preferred_element_type=jnp.float32)                  # (H,T,T)
    s = s + bias_ref[...][None, :, :]        # additive -1e30 key mask (finite)
    m = jnp.max(s, axis=-1, keepdims=True)
    p = jnp.exp(s - m)
    p = p * pl.reciprocal(jnp.sum(p, axis=-1, keepdims=True), approx=True)

    attn = jnp.einsum('hqk,hkd->hqd', p.astype(jnp.bfloat16),
                      vh.astype(jnp.bfloat16),
                      preferred_element_type=jnp.float32)               # (H,T,hs)
    # reassemble heads to (T, C) once, then a single full-depth output matmul
    attn2d = jnp.concatenate([attn[h] for h in range(H)], axis=-1)      # (T, C)
    sa = jnp.dot(attn2d.astype(jnp.bfloat16), wo_ref[...],
                 preferred_element_type=jnp.float32) + bo_ref[...]
    x = x + sa

    # ---------------------------- feed forward ------------------------------ #
    h2 = _layernorm(x, ln2g_ref[...], ln2b_ref[...])
    f = jnp.dot(h2.astype(jnp.bfloat16), w1_ref[...],
                preferred_element_type=jnp.float32) + b1_ref[...]
    f = jnp.maximum(f, 0.0)
    f = jnp.dot(f.astype(jnp.bfloat16), w2_ref[...],
                preferred_element_type=jnp.float32) + b2_ref[...]
    x = x + f

    x_acc[...] = x

    # ---------------- final layernorm + classification head ---------------- #
    @pl.when(layer == pl.num_programs(1) - 1)
    def _():
        hf = _layernorm(x, lnfg_ref[...], lnfb_ref[...])
        logits_ref[...] = (jnp.dot(hf.astype(jnp.bfloat16), wh_ref[...],
                                   preferred_element_type=jnp.float32)
                           + bh_ref[...])


# ----------------------------- wrapper -------------------------------------- #

def encoder_forward(params, x_tokens, attention_mask, head_count):
    B, T = x_tokens.shape
    C = params['tok_emb'].shape[1]
    L = params['wq'].shape[0]
    hs = C // head_count

    # token embedding lookup (gather stays in XLA glue)
    x3d = jnp.take(params['tok_emb'], x_tokens, axis=0)                  # (B, T, C)

    # Additive key-mask bias per batch element (finite -1e30, avoids -inf NaNs).
    key_bias = jnp.where(attention_mask[:, None, :] > 0.5,
                         0.0, -1e30).astype(jnp.float32)                 # (B, 1, T)

    def per_layer(*shp):
        n = len(shp)
        return pl.BlockSpec((None,) + shp, lambda b, l, n=n: (l,) + (0,) * n)

    def per_batch(*shp):
        n = len(shp)
        return pl.BlockSpec((None,) + shp, lambda b, l, n=n: (b,) + (0,) * n)

    def const(*shp):
        n = len(shp)
        return pl.BlockSpec(shp, lambda b, l, n=n: (0,) * n)

    in_specs = [
        per_batch(T, C),                                   # x (token embeddings)
        per_batch(1, T),                                   # additive key mask
        per_layer(1, C), per_layer(1, C),                  # ln1 gamma / beta
        per_layer(head_count, C, hs), per_layer(head_count, 1, hs),   # wq / bq
        per_layer(head_count, C, hs), per_layer(head_count, 1, hs),   # wk / bk
        per_layer(head_count, C, hs), per_layer(head_count, 1, hs),   # wv / bv
        per_layer(C, C), per_layer(1, C),                  # wo / bo
        per_layer(1, C), per_layer(1, C),                  # ln2 gamma / beta
        per_layer(C, 4 * C), per_layer(1, 4 * C),          # w1 / b1
        per_layer(4 * C, C), per_layer(1, C),              # w2 / b2
        const(1, C), const(1, C),                          # ln_f gamma / beta
        const(C, HEAD_PAD), const(1, HEAD_PAD),            # padded head w / b
    ]

    # TODO(synk): for large C on v7x set vmem_limit_bytes explicitly and tile
    # the FFN / qkv column dims; on v6e optionally pipeline_mode=pl.Buffered(3)
    # for the big weight stacks.  Not needed at these shapes.
    logits_pad = pl.pallas_call(
        functools.partial(_encoder_kernel, head_count),
        out_shape=jax.ShapeDtypeStruct((B, T, HEAD_PAD), jnp.float32),
        grid_spec=pltpu.PrefetchScalarGridSpec(
            num_scalar_prefetch=0,
            grid=(B, L),
            in_specs=in_specs,
            out_specs=pl.BlockSpec((None, T, HEAD_PAD), lambda b, l: (b, 0, 0)),
            scratch_shapes=[pltpu.VMEM((T, C), jnp.float32)],
        ),
        compiler_params=pltpu.CompilerParams(
            dimension_semantics=("parallel", "arbitrary")),
    )(x3d, key_bias,
      params['ln1_g'], params['ln1_b'],
      params['wq'], params['bq'], params['wk'], params['bk'],
      params['wv'], params['bv'], params['wo'], params['bo'],
      params['ln2_g'], params['ln2_b'],
      params['w1'], params['b1'], params['w2'], params['b2'],
      params['lnf_g'], params['lnf_b'], params['wh'], params['bh'])

    logits = logits_pad[:, :, :2]                                        # (B, T, 2)

    # masked_select equivalent: positions where the padding mask transitions.
    shift = jnp.concatenate(
        [attention_mask[:, 1:], jnp.zeros((B, 1), attention_mask.dtype)], axis=-1)
    logits_mask = jnp.broadcast_to((shift != attention_mask)[:, :, None], (B, T, 2))
    # TODO(synk): torch.masked_select is dynamically shaped; with standard
    # contiguous padding masks there is exactly one transition per row, so the
    # selected count is statically 2*B and we gather via jnp.nonzero(size=2*B).
    idx = jnp.nonzero(logits_mask.reshape(-1), size=2 * B)[0]
    return logits.reshape(-1)[idx].reshape(-1, 2)                        # (B, 2)


# ----------------------------- parameters ----------------------------------- #

def init_params(key, n_vocab, n_embed, block_size, head_count, n_layers):
    C = n_embed
    H = head_count
    hs = C // H
    scale = hs ** -0.5
    ks = jax.random.split(key, 9)

    def normal(k, shape):
        return 0.02 * jax.random.normal(k, shape, dtype=jnp.float32)

    return {
        'tok_emb': normal(ks[0], (n_vocab, C)),
        'pos_emb': normal(ks[1], (block_size, C)),   # present in __init__, unused
        'ln1_g': jnp.ones((n_layers, 1, C), jnp.float32),
        'ln1_b': jnp.zeros((n_layers, 1, C), jnp.float32),
        # per-head projection weights (L, H, C, hs); 1/sqrt(hs) folded into Q
        # weights (and Q bias — zeros here) so the kernel never scales scores.
        'wq': (normal(ks[2], (n_layers, H, C, hs)) * scale).astype(jnp.bfloat16),
        'bq': (jnp.zeros((n_layers, H, 1, hs), jnp.float32) * scale),
        'wk': normal(ks[3], (n_layers, H, C, hs)).astype(jnp.bfloat16),
        'bk': jnp.zeros((n_layers, H, 1, hs), jnp.float32),
        'wv': normal(ks[4], (n_layers, H, C, hs)).astype(jnp.bfloat16),
        'bv': jnp.zeros((n_layers, H, 1, hs), jnp.float32),
        'wo': normal(ks[5], (n_layers, C, C)).astype(jnp.bfloat16),
        'bo': jnp.zeros((n_layers, 1, C), jnp.float32),
        'ln2_g': jnp.ones((n_layers, 1, C), jnp.float32),
        'ln2_b': jnp.zeros((n_layers, 1, C), jnp.float32),
        'w1': normal(ks[6], (n_layers, C, 4 * C)).astype(jnp.bfloat16),
        'b1': jnp.zeros((n_layers, 1, 4 * C), jnp.float32),
        'w2': normal(ks[7], (n_layers, 4 * C, C)).astype(jnp.bfloat16),
        'b2': jnp.zeros((n_layers, 1, C), jnp.float32),
        'lnf_g': jnp.ones((1, C), jnp.float32),
        'lnf_b': jnp.zeros((1, C), jnp.float32),
        # classification head padded to 128 lanes (only the first 2 cols real)
        'wh': jnp.pad(normal(ks[8], (C, 2)),
                      ((0, 0), (0, HEAD_PAD - 2))).astype(jnp.bfloat16),
        'bh': jnp.zeros((1, HEAD_PAD), jnp.float32),
    }


# ----------------------------- main ------------------------------------------ #

if __name__ == "__main__":
    n_vocab, n_embed, block_size = 50, 32, 8
    head_count, n_layers = 4, 2
    B, T = 2, block_size

    key = jax.random.PRNGKey(0)
    kp, kx = jax.random.split(key)
    params = init_params(kp, n_vocab, n_embed, block_size, head_count, n_layers)

    x_tokens = jax.random.randint(kx, (B, T), 0, n_vocab, dtype=jnp.int32)
    # standard padding mask: contiguous 1s then 0s -> one transition per row
    attention_mask = jnp.array(
        [[1, 1, 1, 1, 1, 0, 0, 0],
         [1, 1, 1, 0, 0, 0, 0, 0]], dtype=jnp.float32)

    fwd = jax.jit(functools.partial(encoder_forward, head_count=head_count))
    logits = fwd(params, x_tokens, attention_mask)
    jax.block_until_ready(logits)

    assert logits.shape == (B, 2) and logits.dtype == jnp.float32
    assert bool(jnp.all(jnp.isfinite(logits)))
    print("KERNEL_OK")
</pallas_src>

<mosaic_0001>
module attributes {stable_mosaic.version = 11 : i64} {
  func.func private @main(%arg0: i32) attributes {dimension_semantics = [#tpu.dimension_semantics<core_parallel>], iteration_bounds = array<i64: 2>, tpu.core_type = #tpu.core_type<sc_scalar_subcore>, window_params = []} {
    return
  }
}

module attributes {stable_mosaic.version = 11 : i64} {
  func.func private @main(%arg0: i32) attributes {dimension_semantics = [#tpu.dimension_semantics<core_parallel>], iteration_bounds = array<i64: 2>, tpu.core_type = #tpu.core_type<sc_scalar_subcore>, window_params = []} {
    return
  }
}

module attributes {stable_mosaic.version = 11 : i64} {
  func.func @_encoder_kernel(%arg0: i32, %arg1: i32, %arg2: memref<1x8x32xf32, #tpu.memory_space<vmem>>, %arg3: memref<1x1x8xf32, #tpu.memory_space<vmem>>, %arg4: memref<1x1x32xf32, #tpu.memory_space<vmem>>, %arg5: memref<1x1x32xf32, #tpu.memory_space<vmem>>, %arg6: memref<1x4x32x8xbf16, #tpu.memory_space<vmem>>, %arg7: memref<1x4x1x8xf32, #tpu.memory_space<vmem>>, %arg8: memref<1x4x32x8xbf16, #tpu.memory_space<vmem>>, %arg9: memref<1x4x1x8xf32, #tpu.memory_space<vmem>>, %arg10: memref<1x4x32x8xbf16, #tpu.memory_space<vmem>>, %arg11: memref<1x4x1x8xf32, #tpu.memory_space<vmem>>, %arg12: memref<1x32x32xbf16, #tpu.memory_space<vmem>>, %arg13: memref<1x1x32xf32, #tpu.memory_space<vmem>>, %arg14: memref<1x1x32xf32, #tpu.memory_space<vmem>>, %arg15: memref<1x1x32xf32, #tpu.memory_space<vmem>>, %arg16: memref<1x32x128xbf16, #tpu.memory_space<vmem>>, %arg17: memref<1x1x128xf32, #tpu.memory_space<vmem>>, %arg18: memref<1x128x32xbf16, #tpu.memory_space<vmem>>, %arg19: memref<1x1x32xf32, #tpu.memory_space<vmem>>, %arg20: memref<1x32xf32, #tpu.memory_space<vmem>>, %arg21: memref<1x32xf32, #tpu.memory_space<vmem>>, %arg22: memref<32x128xbf16, #tpu.memory_space<vmem>>, %arg23: memref<1x128xf32, #tpu.memory_space<vmem>>, %arg24: memref<1x8x128xf32, #tpu.memory_space<vmem>>, %arg25: memref<8x32xf32, #tpu.memory_space<vmem>>) attributes {dimension_semantics = [#tpu.dimension_semantics<parallel>, #tpu.dimension_semantics<arbitrary>], iteration_bounds = array<i64: 2, 2>, scalar_prefetch = 0 : i64, scratch_operands = 1 : i64, tpu.core_type = #tpu.core_type<tc>, window_params = [{transform_indices = @transform_0, window_bounds = array<i64: 1, 8, 32>}, {transform_indices = @transform_1, window_bounds = array<i64: 1, 1, 8>}, {transform_indices = @transform_2, window_bounds = array<i64: 1, 1, 32>}, {transform_indices = @transform_3, window_bounds = array<i64: 1, 1, 32>}, {transform_indices = @transform_4, window_bounds = array<i64: 1, 4, 32, 8>}, {transform_indices = @transform_5, window_bounds = array<i64: 1, 4, 1, 8>}, {transform_indices = @transform_6, window_bounds = array<i64: 1, 4, 32, 8>}, {transform_indices = @transform_7, window_bounds = array<i64: 1, 4, 1, 8>}, {transform_indices = @transform_8, window_bounds = array<i64: 1, 4, 32, 8>}, {transform_indices = @transform_9, window_bounds = array<i64: 1, 4, 1, 8>}, {transform_indices = @transform_10, window_bounds = array<i64: 1, 32, 32>}, {transform_indices = @transform_11, window_bounds = array<i64: 1, 1, 32>}, {transform_indices = @transform_12, window_bounds = array<i64: 1, 1, 32>}, {transform_indices = @transform_13, window_bounds = array<i64: 1, 1, 32>}, {transform_indices = @transform_14, window_bounds = array<i64: 1, 32, 128>}, {transform_indices = @transform_15, window_bounds = array<i64: 1, 1, 128>}, {transform_indices = @transform_16, window_bounds = array<i64: 1, 128, 32>}, {transform_indices = @transform_17, window_bounds = array<i64: 1, 1, 32>}, {pipeline_mode = #tpu.pipeline_mode<synchronous>, transform_indices = @transform_18, window_bounds = array<i64: 1, 32>}, {pipeline_mode = #tpu.pipeline_mode<synchronous>, transform_indices = @transform_19, window_bounds = array<i64: 1, 32>}, {pipeline_mode = #tpu.pipeline_mode<synchronous>, transform_indices = @transform_20, window_bounds = array<i64: 32, 128>}, {pipeline_mode = #tpu.pipeline_mode<synchronous>, transform_indices = @transform_21, window_bounds = array<i64: 1, 128>}, {transform_indices = @transform_22, window_bounds = array<i64: 1, 8, 128>}]} {
    %c0_i32 = arith.constant 0 : i32
    %0 = arith.cmpi eq, %arg1, %c0_i32 : i32
    %1 = arith.extui %0 : i1 to i32
    %c0_i32_0 = arith.constant 0 : i32
    %2 = arith.cmpi ne, %1, %c0_i32_0 : i32
    scf.if %2 {
      %c0_82 = arith.constant 0 : index
      %c0_83 = arith.constant 0 : index
      %c0_84 = arith.constant 0 : index
      %143 = vector.load %arg2[%c0_82, %c0_83, %c0_84] : memref<1x8x32xf32, #tpu.memory_space<vmem>>, vector<1x8x32xf32>
      %144 = vector.shape_cast %143 : vector<1x8x32xf32> to vector<8x32xf32>
      %c0_85 = arith.constant 0 : index
      %c0_86 = arith.constant 0 : index
      %145 = vector.load %arg25[%c0_85, %c0_86] : memref<8x32xf32, #tpu.memory_space<vmem>>, vector<8x32xf32>
      tpu.vector_store %arg25[%c0_85, %c0_86], %144 {strides = array<i32>} : memref<8x32xf32, #tpu.memory_space<vmem>>, vector<8x32xf32>,
    } else {
    }
    %c0 = arith.constant 0 : index
    %c0_1 = arith.constant 0 : index
    %3 = vector.load %arg25[%c0, %c0_1] : memref<8x32xf32, #tpu.memory_space<vmem>>, vector<8x32xf32>
    %c0_2 = arith.constant 0 : index
    %c0_3 = arith.constant 0 : index
    %c0_4 = arith.constant 0 : index
    %4 = vector.load %arg4[%c0_2, %c0_3, %c0_4] : memref<1x1x32xf32, #tpu.memory_space<vmem>>, vector<1x1x32xf32>
    %5 = vector.shape_cast %4 : vector<1x1x32xf32> to vector<1x32xf32>
    %c0_5 = arith.constant 0 : index
    %c0_6 = arith.constant 0 : index
    %c0_7 = arith.constant 0 : index
    %6 = vector.load %arg5[%c0_5, %c0_6, %c0_7] : memref<1x1x32xf32, #tpu.memory_space<vmem>>, vector<1x1x32xf32>
    %7 = vector.shape_cast %6 : vector<1x1x32xf32> to vector<1x32xf32>
    %cst = arith.constant dense<0.000000e+00> : vector<8xf32>
    %8 = vector.multi_reduction <add>, %3, %cst [1] : vector<8x32xf32> to vector<8xf32>
    %9 = vector.shape_cast %8 : vector<8xf32> to vector<8x1xf32>
    %cst_8 = arith.constant 3.200000e+01 : f32
    %10 = vector.broadcast %cst_8 : f32 to vector<8x1xf32>
    %11 = arith.divf %9, %10 : vector<8x1xf32>
    %12 = vector.broadcast %11 : vector<8x1xf32> to vector<8x32xf32>
    %13 = arith.subf %3, %12 : vector<8x32xf32>
    %14 = arith.mulf %13, %13 : vector<8x32xf32>
    %cst_9 = arith.constant dense<0.000000e+00> : vector<8xf32>
    %15 = vector.multi_reduction <add>, %14, %cst_9 [1] : vector<8x32xf32> to vector<8xf32>
    %16 = vector.shape_cast %15 : vector<8xf32> to vector<8x1xf32>
    %cst_10 = arith.constant 3.200000e+01 : f32
    %17 = vector.broadcast %cst_10 : f32 to vector<8x1xf32>
    %18 = arith.divf %16, %17 : vector<8x1xf32>
    %19 = vector.broadcast %11 : vector<8x1xf32> to vector<8x32xf32>
    %20 = arith.subf %3, %19 : vector<8x32xf32>
    %cst_11 = arith.constant 9.99999974E-6 : f32
    %21 = vector.broadcast %cst_11 : f32 to vector<8x1xf32>
    %22 = arith.addf %18, %21 : vector<8x1xf32>
    %23 = math.rsqrt %22 : vector<8x1xf32>
    %24 = vector.broadcast %23 : vector<8x1xf32> to vector<8x32xf32>
    %25 = arith.mulf %20, %24 : vector<8x32xf32>
    %26 = vector.broadcast %5 : vector<1x32xf32> to vector<8x32xf32>
    %27 = arith.mulf %25, %26 : vector<8x32xf32>
    %28 = vector.broadcast %7 : vector<1x32xf32> to vector<8x32xf32>
    %29 = arith.addf %27, %28 : vector<8x32xf32>
    %30 = arith.truncf %29 : vector<8x32xf32> to vector<8x32xbf16>
    %31 = vector.shape_cast %30 : vector<8x32xbf16> to vector<1x8x32xbf16>
    %32 = vector.shape_cast %31 : vector<1x8x32xbf16> to vector<1x8x32xbf16>
    %33 = vector.broadcast %32 : vector<1x8x32xbf16> to vector<4x8x32xbf16>
    %c0_12 = arith.constant 0 : index
    %c0_13 = arith.constant 0 : index
    %c0_14 = arith.constant 0 : index
    %c0_15 = arith.constant 0 : index
    %34 = vector.load %arg6[%c0_12, %c0_13, %c0_14, %c0_15] : memref<1x4x32x8xbf16, #tpu.memory_space<vmem>>, vector<1x4x32x8xbf16>
    %35 = vector.shape_cast %34 : vector<1x4x32x8xbf16> to vector<4x32x8xbf16>
    "tpu.trace_start"() <{level = 10 : i32, message = "htc,hcf->htf"}> : () -> ()
    %cst_16 = arith.constant dense<0.000000e+00> : vector<4x8x8xf32>
    %36 = tpu.matmul %33, %35, %cst_16 {dimension_numbers = #tpu.dot_dimension_numbers<[2], [1], [1], [2], [0, 0, 0, 1, 1, 2], [0], [0]>} : vector<4x8x32xbf16>, vector<4x32x8xbf16>, vector<4x8x8xf32> -> vector<4x8x8xf32>
    "tpu.trace_stop"() : () -> ()
    %c0_17 = arith.constant 0 : index
    %c0_18 = arith.constant 0 : index
    %c0_19 = arith.constant 0 : index
    %c0_20 = arith.constant 0 : index
    %37 = vector.load %arg7[%c0_17, %c0_18, %c0_19, %c0_20] : memref<1x4x1x8xf32, #tpu.memory_space<vmem>>, vector<1x4x1x8xf32>
    %38 = vector.shape_cast %37 : vector<1x4x1x8xf32> to vector<4x1x8xf32>
    %39 = vector.broadcast %38 : vector<4x1x8xf32> to vector<4x8x8xf32>
    %40 = arith.addf %36, %39 : vector<4x8x8xf32>
    %c0_21 = arith.constant 0 : index
    %c0_22 = arith.constant 0 : index
    %c0_23 = arith.constant 0 : index
    %c0_24 = arith.constant 0 : index
    %41 = vector.load %arg8[%c0_21, %c0_22, %c0_23, %c0_24] : memref<1x4x32x8xbf16, #tpu.memory_space<vmem>>, vector<1x4x32x8xbf16>
    %42 = vector.shape_cast %41 : vector<1x4x32x8xbf16> to vector<4x32x8xbf16>
    "tpu.trace_start"() <{level = 10 : i32, message = "htc,hcf->htf"}> : () -> ()
    %cst_25 = arith.constant dense<0.000000e+00> : vector<4x8x8xf32>
    %43 = tpu.matmul %33, %42, %cst_25 {dimension_numbers = #tpu.dot_dimension_numbers<[2], [1], [1], [2], [0, 0, 0, 1, 1, 2], [0], [0]>} : vector<4x8x32xbf16>, vector<4x32x8xbf16>, vector<4x8x8xf32> -> vector<4x8x8xf32>
    "tpu.trace_stop"() : () -> ()
    %c0_26 = arith.constant 0 : index
    %c0_27 = arith.constant 0 : index
    %c0_28 = arith.constant 0 : index
    %c0_29 = arith.constant 0 : index
    %44 = vector.load %arg9[%c0_26, %c0_27, %c0_28, %c0_29] : memref<1x4x1x8xf32, #tpu.memory_space<vmem>>, vector<1x4x1x8xf32>
    %45 = vector.shape_cast %44 : vector<1x4x1x8xf32> to vector<4x1x8xf32>
    %46 = vector.broadcast %45 : vector<4x1x8xf32> to vector<4x8x8xf32>
    %47 = arith.addf %43, %46 : vector<4x8x8xf32>
    %c0_30 = arith.constant 0 : index
    %c0_31 = arith.constant 0 : index
    %c0_32 = arith.constant 0 : index
    %c0_33 = arith.constant 0 : index
    %48 = vector.load %arg10[%c0_30, %c0_31, %c0_32, %c0_33] : memref<1x4x32x8xbf16, #tpu.memory_space<vmem>>, vector<1x4x32x8xbf16>
    %49 = vector.shape_cast %48 : vector<1x4x32x8xbf16> to vector<4x32x8xbf16>
    "tpu.trace_start"() <{level = 10 : i32, message = "htc,hcf->htf"}> : () -> ()
    %cst_34 = arith.constant dense<0.000000e+00> : vector<4x8x8xf32>
    %50 = tpu.matmul %33, %49, %cst_34 {dimension_numbers = #tpu.dot_dimension_numbers<[2], [1], [1], [2], [0, 0, 0, 1, 1, 2], [0], [0]>} : vector<4x8x32xbf16>, vector<4x32x8xbf16>, vector<4x8x8xf32> -> vector<4x8x8xf32>
    "tpu.trace_stop"() : () -> ()
    %c0_35 = arith.constant 0 : index
    %c0_36 = arith.constant 0 : index
    %c0_37 = arith.constant 0 : index
    %c0_38 = arith.constant 0 : index
    %51 = vector.load %arg11[%c0_35, %c0_36, %c0_37, %c0_38] : memref<1x4x1x8xf32, #tpu.memory_space<vmem>>, vector<1x4x1x8xf32>
    %52 = vector.shape_cast %51 : vector<1x4x1x8xf32> to vector<4x1x8xf32>
    %53 = vector.broadcast %52 : vector<4x1x8xf32> to vector<4x8x8xf32>
    %54 = arith.addf %50, %53 : vector<4x8x8xf32>
    %55 = arith.truncf %40 : vector<4x8x8xf32> to vector<4x8x8xbf16>
    %56 = arith.truncf %47 : vector<4x8x8xf32> to vector<4x8x8xbf16>
    "tpu.trace_start"() <{level = 10 : i32, message = "hqd,hkd->hqk"}> : () -> ()
    %cst_39 = arith.constant dense<0.000000e+00> : vector<4x8x8xf32>
    %57 = tpu.matmul %55, %56, %cst_39 {dimension_numbers = #tpu.dot_dimension_numbers<[2], [2], [1], [1], [0, 0, 0, 1, 1, 1], [0], [0]>} : vector<4x8x8xbf16>, vector<4x8x8xbf16>, vector<4x8x8xf32> -> vector<4x8x8xf32>
    "tpu.trace_stop"() : () -> ()
    %c0_40 = arith.constant 0 : index
    %c0_41 = arith.constant 0 : index
    %c0_42 = arith.constant 0 : index
    %58 = vector.load %arg3[%c0_40, %c0_41, %c0_42] : memref<1x1x8xf32, #tpu.memory_space<vmem>>, vector<1x1x8xf32>
    %59 = vector.shape_cast %58 : vector<1x1x8xf32> to vector<1x8xf32>
    %60 = vector.shape_cast %59 : vector<1x8xf32> to vector<1x1x8xf32>
    %61 = vector.broadcast %60 : vector<1x1x8xf32> to vector<4x8x8xf32>
    %62 = arith.addf %57, %61 : vector<4x8x8xf32>
    %cst_43 = arith.constant dense<0xFF800000> : vector<4x8xf32>
    %63 = vector.multi_reduction <maximumf>, %62, %cst_43 [2] : vector<4x8x8xf32> to vector<4x8xf32>
    %64 = vector.shape_cast %63 : vector<4x8xf32> to vector<4x8x1xf32>
    %65 = vector.broadcast %64 : vector<4x8x1xf32> to vector<4x8x8xf32>
    %66 = arith.subf %62, %65 : vector<4x8x8xf32>
    %67 = math.exp %66 : vector<4x8x8xf32>
    %cst_44 = arith.constant dense<0.000000e+00> : vector<4x8xf32>
    %68 = vector.multi_reduction <add>, %67, %cst_44 [2] : vector<4x8x8xf32> to vector<4x8xf32>
    %69 = vector.shape_cast %68 : vector<4x8xf32> to vector<4x8x1xf32>
    %70 = tpu.reciprocal %69 {approx = true} : vector<4x8x1xf32> -> vector<4x8x1xf32>
    %71 = vector.broadcast %70 : vector<4x8x1xf32> to vector<4x8x8xf32>
    %72 = arith.mulf %67, %71 : vector<4x8x8xf32>
    %73 = arith.truncf %72 : vector<4x8x8xf32> to vector<4x8x8xbf16>
    %74 = arith.truncf %54 : vector<4x8x8xf32> to vector<4x8x8xbf16>
    "tpu.trace_start"() <{level = 10 : i32, message = "hqk,hkd->hqd"}> : () -> ()
    %cst_45 = arith.constant dense<0.000000e+00> : vector<4x8x8xf32>
    %75 = tpu.matmul %73, %74, %cst_45 {dimension_numbers = #tpu.dot_dimension_numbers<[2], [1], [1], [2], [0, 0, 0, 1, 1, 2], [0], [0]>} : vector<4x8x8xbf16>, vector<4x8x8xbf16>, vector<4x8x8xf32> -> vector<4x8x8xf32>
    "tpu.trace_stop"() : () -> ()
    %76 = vector.extract_strided_slice %75 {offsets = [0, 0, 0], sizes = [1, 8, 8], strides = [1, 1, 1]} : vector<4x8x8xf32> to vector<1x8x8xf32>
    %77 = vector.shape_cast %76 : vector<1x8x8xf32> to vector<8x8xf32>
    %78 = vector.extract_strided_slice %75 {offsets = [1, 0, 0], sizes = [1, 8, 8], strides = [1, 1, 1]} : vector<4x8x8xf32> to vector<1x8x8xf32>
    %79 = vector.shape_cast %78 : vector<1x8x8xf32> to vector<8x8xf32>
    %80 = vector.extract_strided_slice %75 {offsets = [2, 0, 0], sizes = [1, 8, 8], strides = [1, 1, 1]} : vector<4x8x8xf32> to vector<1x8x8xf32>
    %81 = vector.shape_cast %80 : vector<1x8x8xf32> to vector<8x8xf32>
    %82 = vector.extract_strided_slice %75 {offsets = [3, 0, 0], sizes = [1, 8, 8], strides = [1, 1, 1]} : vector<4x8x8xf32> to vector<1x8x8xf32>
    %83 = vector.shape_cast %82 : vector<1x8x8xf32> to vector<8x8xf32>
    %84 = tpu.concatenate %77, %79, %81, %83 in 1 : vector<8x8xf32>, vector<8x8xf32>, vector<8x8xf32>, vector<8x8xf32> -> vector<8x32xf32>
    %85 = arith.truncf %84 : vector<8x32xf32> to vector<8x32xbf16>
    %c0_46 = arith.constant 0 : index
    %c0_47 = arith.constant 0 : index
    %c0_48 = arith.constant 0 : index
    %86 = vector.load %arg12[%c0_46, %c0_47, %c0_48] : memref<1x32x32xbf16, #tpu.memory_space<vmem>>, vector<1x32x32xbf16>
    %87 = vector.shape_cast %86 : vector<1x32x32xbf16> to vector<32x32xbf16>
    %cst_49 = arith.constant dense<0.000000e+00> : vector<8x32xf32>
    %88 = tpu.matmul %85, %87, %cst_49 {dimension_numbers = #tpu.dot_dimension_numbers<[1], [0], [0], [1], [0, 0, 1, 1], [], []>} : vector<8x32xbf16>, vector<32x32xbf16>, vector<8x32xf32> -> vector<8x32xf32>
    %c0_50 = arith.constant 0 : index
    %c0_51 = arith.constant 0 : index
    %c0_52 = arith.constant 0 : index
    %89 = vector.load %arg13[%c0_50, %c0_51, %c0_52] : memref<1x1x32xf32, #tpu.memory_space<vmem>>, vector<1x1x32xf32>
    %90 = vector.shape_cast %89 : vector<1x1x32xf32> to vector<1x32xf32>
    %91 = vector.broadcast %90 : vector<1x32xf32> to vector<8x32xf32>
    %92 = arith.addf %88, %91 : vector<8x32xf32>
    %93 = arith.addf %3, %92 : vector<8x32xf32>
    %c0_53 = arith.constant 0 : index
    %c0_54 = arith.constant 0 : index
    %c0_55 = arith.constant 0 : index
    %94 = vector.load %arg14[%c0_53, %c0_54, %c0_55] : memref<1x1x32xf32, #tpu.memory_space<vmem>>, vector<1x1x32xf32>
    %95 = vector.shape_cast %94 : vector<1x1x32xf32> to vector<1x32xf32>
    %c0_56 = arith.constant 0 : index
    %c0_57 = arith.constant 0 : index
    %c0_58 = arith.constant 0 : index
    %96 = vector.load %arg15[%c0_56, %c0_57, %c0_58] : memref<1x1x32xf32, #tpu.memory_space<vmem>>, vector<1x1x32xf32>
    %97 = vector.shape_cast %96 : vector<1x1x32xf32> to vector<1x32xf32>
    %cst_59 = arith.constant dense<0.000000e+00> : vector<8xf32>
    %98 = vector.multi_reduction <add>, %93, %cst_59 [1] : vector<8x32xf32> to vector<8xf32>
    %99 = vector.shape_cast %98 : vector<8xf32> to vector<8x1xf32>
    %cst_60 = arith.constant 3.200000e+01 : f32
    %100 = vector.broadcast %cst_60 : f32 to vector<8x1xf32>
    %101 = arith.divf %99, %100 : vector<8x1xf32>
    %102 = vector.broadcast %101 : vector<8x1xf32> to vector<8x32xf32>
    %103 = arith.subf %93, %102 : vector<8x32xf32>
    %104 = arith.mulf %103, %103 : vector<8x32xf32>
    %cst_61 = arith.constant dense<0.000000e+00> : vector<8xf32>
    %105 = vector.multi_reduction <add>, %104, %cst_61 [1] : vector<8x32xf32> to vector<8xf32>
    %106 = vector.shape_cast %105 : vector<8xf32> to vector<8x1xf32>
    %cst_62 = arith.constant 3.200000e+01 : f32
    %107 = vector.broadcast %cst_62 : f32 to vector<8x1xf32>
    %108 = arith.divf %106, %107 : vector<8x1xf32>
    %109 = vector.broadcast %101 : vector<8x1xf32> to vector<8x32xf32>
    %110 = arith.subf %93, %109 : vector<8x32xf32>
    %cst_63 = arith.constant 9.99999974E-6 : f32
    %111 = vector.broadcast %cst_63 : f32 to vector<8x1xf32>
    %112 = arith.addf %108, %111 : vector<8x1xf32>
    %113 = math.rsqrt %112 : vector<8x1xf32>
    %114 = vector.broadcast %113 : vector<8x1xf32> to vector<8x32xf32>
    %115 = arith.mulf %110, %114 : vector<8x32xf32>
    %116 = vector.broadcast %95 : vector<1x32xf32> to vector<8x32xf32>
    %117 = arith.mulf %115, %116 : vector<8x32xf32>
    %118 = vector.broadcast %97 : vector<1x32xf32> to vector<8x32xf32>
    %119 = arith.addf %117, %118 : vector<8x32xf32>
    %120 = arith.truncf %119 : vector<8x32xf32> to vector<8x32xbf16>
    %c0_64 = arith.constant 0 : index
    %c0_65 = arith.constant 0 : index
    %c0_66 = arith.constant 0 : index
    %121 = vector.load %arg16[%c0_64, %c0_65, %c0_66] : memref<1x32x128xbf16, #tpu.memory_space<vmem>>, vector<1x32x128xbf16>
    %122 = vector.shape_cast %121 : vector<1x32x128xbf16> to vector<32x128xbf16>
    %cst_67 = arith.constant dense<0.000000e+00> : vector<8x128xf32>
    %123 = tpu.matmul %120, %122, %cst_67 {dimension_numbers = #tpu.dot_dimension_numbers<[1], [0], [0], [1], [0, 0, 1, 1], [], []>} : vector<8x32xbf16>, vector<32x128xbf16>, vector<8x128xf32> -> vector<8x128xf32>
    %c0_68 = arith.constant 0 : index
    %c0_69 = arith.constant 0 : index
    %c0_70 = arith.constant 0 : index
    %124 = vector.load %arg17[%c0_68, %c0_69, %c0_70] : memref<1x1x128xf32, #tpu.memory_space<vmem>>, vector<1x1x128xf32>
    %125 = vector.shape_cast %124 : vector<1x1x128xf32> to vector<1x128xf32>
    %126 = vector.broadcast %125 : vector<1x128xf32> to vector<8x128xf32>
    %127 = arith.addf %123, %126 : vector<8x128xf32>
    %cst_71 = arith.constant 0.000000e+00 : f32
    %128 = vector.broadcast %cst_71 : f32 to vector<8x128xf32>
    %129 = arith.maximumf %127, %128 : vector<8x128xf32>
    %130 = arith.truncf %129 : vector<8x128xf32> to vector<8x128xbf16>
    %c0_72 = arith.constant 0 : index
    %c0_73 = arith.constant 0 : index
    %c0_74 = arith.constant 0 : index
    %131 = vector.load %arg18[%c0_72, %c0_73, %c0_74] : memref<1x128x32xbf16, #tpu.memory_space<vmem>>, vector<1x128x32xbf16>
    %132 = vector.shape_cast %131 : vector<1x128x32xbf16> to vector<128x32xbf16>
    %cst_75 = arith.constant dense<0.000000e+00> : vector<8x32xf32>
    %133 = tpu.matmul %130, %132, %cst_75 {dimension_numbers = #tpu.dot_dimension_numbers<[1], [0], [0], [1], [0, 0, 1, 1], [], []>} : vector<8x128xbf16>, vector<128x32xbf16>, vector<8x32xf32> -> vector<8x32xf32>
    %c0_76 = arith.constant 0 : index
    %c0_77 = arith.constant 0 : index
    %c0_78 = arith.constant 0 : index
    %134 = vector.load %arg19[%c0_76, %c0_77, %c0_78] : memref<1x1x32xf32, #tpu.memory_space<vmem>>, vector<1x1x32xf32>
    %135 = vector.shape_cast %134 : vector<1x1x32xf32> to vector<1x32xf32>
    %136 = vector.broadcast %135 : vector<1x32xf32> to vector<8x32xf32>
    %137 = arith.addf %133, %136 : vector<8x32xf32>
    %138 = arith.addf %93, %137 : vector<8x32xf32>
    %c0_79 = arith.constant 0 : index
    %c0_80 = arith.constant 0 : index
    %139 = vector.load %arg25[%c0_79, %c0_80] : memref<8x32xf32, #tpu.memory_space<vmem>>, vector<8x32xf32>
    tpu.vector_store %arg25[%c0_79, %c0_80], %138 {strides = array<i32>} : memref<8x32xf32, #tpu.memory_space<vmem>>, vector<8x32xf32>,
    %c1_i32 = arith.constant 1 : i32
    %140 = arith.cmpi eq, %arg1, %c1_i32 : i32
    %141 = arith.extui %140 : i1 to i32
    %c0_i32_81 = arith.constant 0 : i32
    %142 = arith.cmpi ne, %141, %c0_i32_81 : i32
    scf.if %142 {
      %c0_82 = arith.constant 0 : index
      %c0_83 = arith.constant 0 : index
      %143 = vector.load %arg20[%c0_82, %c0_83] : memref<1x32xf32, #tpu.memory_space<vmem>>, vector<1x32xf32>
      %c0_84 = arith.constant 0 : index
      %c0_85 = arith.constant 0 : index
      %144 = vector.load %arg21[%c0_84, %c0_85] : memref<1x32xf32, #tpu.memory_space<vmem>>, vector<1x32xf32>
      %cst_86 = arith.constant dense<0.000000e+00> : vector<8xf32>
      %145 = vector.multi_reduction <add>, %138, %cst_86 [1] : vector<8x32xf32> to vector<8xf32>
      %146 = vector.shape_cast %145 : vector<8xf32> to vector<8x1xf32>
      %cst_87 = arith.constant 3.200000e+01 : f32
      %147 = vector.broadcast %cst_87 : f32 to vector<8x1xf32>
      %148 = arith.divf %146, %147 : vector<8x1xf32>
      %149 = vector.broadcast %148 : vector<8x1xf32> to vector<8x32xf32>
      %150 = arith.subf %138, %149 : vector<8x32xf32>
      %151 = arith.mulf %150, %150 : vector<8x32xf32>
      %cst_88 = arith.constant dense<0.000000e+00> : vector<8xf32>
      %152 = vector.multi_reduction <add>, %151, %cst_88 [1] : vector<8x32xf32> to vector<8xf32>
      %153 = vector.shape_cast %152 : vector<8xf32> to vector<8x1xf32>
      %cst_89 = arith.constant 3.200000e+01 : f32
      %154 = vector.broadcast %cst_89 : f32 to vector<8x1xf32>
      %155 = arith.divf %153, %154 : vector<8x1xf32>
      %156 = vector.broadcast %148 : vector<8x1xf32> to vector<8x32xf32>
      %157 = arith.subf %138, %156 : vector<8x32xf32>
      %cst_90 = arith.constant 9.99999974E-6 : f32
      %158 = vector.broadcast %cst_90 : f32 to vector<8x1xf32>
      %159 = arith.addf %155, %158 : vector<8x1xf32>
      %160 = math.rsqrt %159 : vector<8x1xf32>
      %161 = vector.broadcast %160 : vector<8x1xf32> to vector<8x32xf32>
      %162 = arith.mulf %157, %161 : vector<8x32xf32>
      %163 = vector.broadcast %143 : vector<1x32xf32> to vector<8x32xf32>
      %164 = arith.mulf %162, %163 : vector<8x32xf32>
      %165 = vector.broadcast %144 : vector<1x32xf32> to vector<8x32xf32>
      %166 = arith.addf %164, %165 : vector<8x32xf32>
      %167 = arith.truncf %166 : vector<8x32xf32> to vector<8x32xbf16>
      %c0_91 = arith.constant 0 : index
      %c0_92 = arith.constant 0 : index
      %168 = vector.load %arg22[%c0_91, %c0_92] : memref<32x128xbf16, #tpu.memory_space<vmem>>, vector<32x128xbf16>
      %cst_93 = arith.constant dense<0.000000e+00> : vector<8x128xf32>
      %169 = tpu.matmul %167, %168, %cst_93 {dimension_numbers = #tpu.dot_dimension_numbers<[1], [0], [0], [1], [0, 0, 1, 1], [], []>} : vector<8x32xbf16>, vector<32x128xbf16>, vector<8x128xf32> -> vector<8x128xf32>
      %c0_94 = arith.constant 0 : index
      %c0_95 = arith.constant 0 : index
      %170 = vector.load %arg23[%c0_94, %c0_95] : memref<1x128xf32, #tpu.memory_space<vmem>>, vector<1x128xf32>
      %171 = vector.broadcast %170 : vector<1x128xf32> to vector<8x128xf32>
      %172 = arith.addf %169, %171 : vector<8x128xf32>
      %c0_96 = arith.constant 0 : index
      %c0_97 = arith.constant 0 : index
      %c0_98 = arith.constant 0 : index
      %173 = vector.load %arg24[%c0_96, %c0_97, %c0_98] : memref<1x8x128xf32, #tpu.memory_space<vmem>>, vector<1x8x128xf32>
      %174 = vector.shape_cast %173 : vector<1x8x128xf32> to vector<8x128xf32>
      %175 = vector.shape_cast %172 : vector<8x128xf32> to vector<1x8x128xf32>
      tpu.vector_store %arg24[%c0_96, %c0_97, %c0_98], %175 {strides = array<i32>} : memref<1x8x128xf32, #tpu.memory_space<vmem>>, vector<1x8x128xf32>,
    } else {
    }
    return
  }
  func.func @transform_0(%arg0: i32, %arg1: i32) -> (i32, i32, i32) {
    %c0_i32 = arith.constant 0 : i32
    %c0_i32_0 = arith.constant 0 : i32
    %c0_i32_1 = arith.constant 0 : i32
    return %arg0, %c0_i32, %c0_i32_0 : i32, i32, i32
  }
  func.func @transform_1(%arg0: i32, %arg1: i32) -> (i32, i32, i32) {
    %c0_i32 = arith.constant 0 : i32
    %c0_i32_0 = arith.constant 0 : i32
    %c0_i32_1 = arith.constant 0 : i32
    return %arg0, %c0_i32, %c0_i32_0 : i32, i32, i32
  }
  func.func @transform_2(%arg0: i32, %arg1: i32) -> (i32, i32, i32) {
    %c0_i32 = arith.constant 0 : i32
    %c0_i32_0 = arith.constant 0 : i32
    %c0_i32_1 = arith.constant 0 : i32
    return %arg1, %c0_i32, %c0_i32_0 : i32, i32, i32
  }
  func.func @transform_3(%arg0: i32, %arg1: i32) -> (i32, i32, i32) {
    %c0_i32 = arith.constant 0 : i32
    %c0_i32_0 = arith.constant 0 : i32
    %c0_i32_1 = arith.constant 0 : i32
    return %arg1, %c0_i32, %c0_i32_0 : i32, i32, i32
  }
  func.func @transform_4(%arg0: i32, %arg1: i32) -> (i32, i32, i32, i32) {
    %c0_i32 = arith.constant 0 : i32
    %c0_i32_0 = arith.constant 0 : i32
    %c0_i32_1 = arith.constant 0 : i32
    %c0_i32_2 = arith.constant 0 : i32
    return %arg1, %c0_i32, %c0_i32_0, %c0_i32_1 : i32, i32, i32, i32
  }
  func.func @transform_5(%arg0: i32, %arg1: i32) -> (i32, i32, i32, i32) {
    %c0_i32 = arith.constant 0 : i32
    %c0_i32_0 = arith.constant 0 : i32
    %c0_i32_1 = arith.constant 0 : i32
    %c0_i32_2 = arith.constant 0 : i32
    return %arg1, %c0_i32, %c0_i32_0, %c0_i32_1 : i32, i32, i32, i32
  }
  func.func @transform_6(%arg0: i32, %arg1: i32) -> (i32, i32, i32, i32) {
    %c0_i32 = arith.constant 0 : i32
    %c0_i32_0 = arith.constant 0 : i32
    %c0_i32_1 = arith.constant 0 : i32
    %c0_i32_2 = arith.constant 0 : i32
    return %arg1, %c0_i32, %c0_i32_0, %c0_i32_1 : i32, i32, i32, i32
  }
  func.func @transform_7(%arg0: i32, %arg1: i32) -> (i32, i32, i32, i32) {
    %c0_i32 = arith.constant 0 : i32
    %c0_i32_0 = arith.constant 0 : i32
    %c0_i32_1 = arith.constant 0 : i32
    %c0_i32_2 = arith.constant 0 : i32
    return %arg1, %c0_i32, %c0_i32_0, %c0_i32_1 : i32, i32, i32, i32
  }
  func.func @transform_8(%arg0: i32, %arg1: i32) -> (i32, i32, i32, i32) {
    %c0_i32 = arith.constant 0 : i32
    %c0_i32_0 = arith.constant 0 : i32
    %c0_i32_1 = arith.constant 0 : i32
    %c0_i32_2 = arith.constant 0 : i32
    return %arg1, %c0_i32, %c0_i32_0, %c0_i32_1 : i32, i32, i32, i32
  }
  func.func @transform_9(%arg0: i32, %arg1: i32) -> (i32, i32, i32, i32) {
    %c0_i32 = arith.constant 0 : i32
    %c0_i32_0 = arith.constant 0 : i32
    %c0_i32_1 = arith.constant 0 : i32
    %c0_i32_2 = arith.constant 0 : i32
    return %arg1, %c0_i32, %c0_i32_0, %c0_i32_1 : i32, i32, i32, i32
  }
  func.func @transform_10(%arg0: i32, %arg1: i32) -> (i32, i32, i32) {
    %c0_i32 = arith.constant 0 : i32
    %c0_i32_0 = arith.constant 0 : i32
    %c0_i32_1 = arith.constant 0 : i32
    return %arg1, %c0_i32, %c0_i32_0 : i32, i32, i32
  }
  func.func @transform_11(%arg0: i32, %arg1: i32) -> (i32, i32, i32) {
    %c0_i32 = arith.constant 0 : i32
    %c0_i32_0 = arith.constant 0 : i32
    %c0_i32_1 = arith.constant 0 : i32
    return %arg1, %c0_i32, %c0_i32_0 : i32, i32, i32
  }
  func.func @transform_12(%arg0: i32, %arg1: i32) -> (i32, i32, i32) {
    %c0_i32 = arith.constant 0 : i32
    %c0_i32_0 = arith.constant 0 : i32
    %c0_i32_1 = arith.constant 0 : i32
    return %arg1, %c0_i32, %c0_i32_0 : i32, i32, i32
  }
  func.func @transform_13(%arg0: i32, %arg1: i32) -> (i32, i32, i32) {
    %c0_i32 = arith.constant 0 : i32
    %c0_i32_0 = arith.constant 0 : i32
    %c0_i32_1 = arith.constant 0 : i32
    return %arg1, %c0_i32, %c0_i32_0 : i32, i32, i32
  }
  func.func @transform_14(%arg0: i32, %arg1: i32) -> (i32, i32, i32) {
    %c0_i32 = arith.constant 0 : i32
    %c0_i32_0 = arith.constant 0 : i32
    %c0_i32_1 = arith.constant 0 : i32
    return %arg1, %c0_i32, %c0_i32_0 : i32, i32, i32
  }
  func.func @transform_15(%arg0: i32, %arg1: i32) -> (i32, i32, i32) {
    %c0_i32 = arith.constant 0 : i32
    %c0_i32_0 = arith.constant 0 : i32
    %c0_i32_1 = arith.constant 0 : i32
    return %arg1, %c0_i32, %c0_i32_0 : i32, i32, i32
  }
  func.func @transform_16(%arg0: i32, %arg1: i32) -> (i32, i32, i32) {
    %c0_i32 = arith.constant 0 : i32
    %c0_i32_0 = arith.constant 0 : i32
    %c0_i32_1 = arith.constant 0 : i32
    return %arg1, %c0_i32, %c0_i32_0 : i32, i32, i32
  }
  func.func @transform_17(%arg0: i32, %arg1: i32) -> (i32, i32, i32) {
    %c0_i32 = arith.constant 0 : i32
    %c0_i32_0 = arith.constant 0 : i32
    %c0_i32_1 = arith.constant 0 : i32
    return %arg1, %c0_i32, %c0_i32_0 : i32, i32, i32
  }
  func.func @transform_18(%arg0: i32, %arg1: i32) -> (i32, i32) {
    %c0_i32 = arith.constant 0 : i32
    %c0_i32_0 = arith.constant 0 : i32
    %c0_i32_1 = arith.constant 0 : i32
    return %c0_i32, %c0_i32_0 : i32, i32
  }
  func.func @transform_19(%arg0: i32, %arg1: i32) -> (i32, i32) {
    %c0_i32 = arith.constant 0 : i32
    %c0_i32_0 = arith.constant 0 : i32
    %c0_i32_1 = arith.constant 0 : i32
    return %c0_i32, %c0_i32_0 : i32, i32
  }
  func.func @transform_20(%arg0: i32, %arg1: i32) -> (i32, i32) {
    %c0_i32 = arith.constant 0 : i32
    %c0_i32_0 = arith.constant 0 : i32
    %c0_i32_1 = arith.constant 0 : i32
    return %c0_i32, %c0_i32_0 : i32, i32
  }
  func.func @transform_21(%arg0: i32, %arg1: i32) -> (i32, i32) {
    %c0_i32 = arith.constant 0 : i32
    %c0_i32_0 = arith.constant 0 : i32
    %c0_i32_1 = arith.constant 0 : i32
    return %c0_i32, %c0_i32_0 : i32, i32
  }
  func.func @transform_22(%arg0: i32, %arg1: i32) -> (i32, i32, i32) {
    %c0_i32 = arith.constant 0 : i32
    %c0_i32_0 = arith.constant 0 : i32
    %c0_i32_1 = arith.constant 0 : i32
    return %arg0, %c0_i32, %c0_i32_0 : i32, i32, i32
  }
}

</mosaic_0001>

<bundles_post_ra>
// kernel: encoder_forward.1
= control target key start
LH: loop header
LB: loop body
LE: loop exit
PB: predicated region body
PF: predicated region fallthrough
CT: control target
= control target key end

     0   :  { %s3497_s28 = smov 0   ;;  %s3499_s29 = smov 0   ;;  %s3910_s0 = inlined_call_operand.vmem [shape: f32[2,8,32], index: 0, kind: input, shape index: {}]   ;;  %s3911_s1 = inlined_call_operand.vmem [shape: f32[2,1,8], index: 1, kind: input, shape index: {}]   ;;  %s3912_s2 = inlined_call_operand.vmem [shape: f32[2,1,32], index: 2, kind: input, shape index: {}]   ;;  %s3913_s3 = inlined_call_operand.vmem [shape: f32[2,1,32], index: 3, kind: input, shape index: {}]   ;;  %s3914_s4 = inlined_call_operand.vmem [shape: bf16[2,4,32,8], index: 4, kind: input, shape index: {}]   ;;  %s3915_s5 = inlined_call_operand.vmem [shape: f32[2,4,1,8], index: 5, kind: input, shape index: {}]   ;;  %s3916_s6 = inlined_call_operand.vmem [shape: bf16[2,4,32,8], index: 6, kind: input, shape index: {}]   ;;  %s3917_s7 = inlined_call_operand.vmem [shape: f32[2,4,1,8], index: 7, kind: input, shape index: {}]   ;;  %s3918_s8 = inlined_call_operand.vmem [shape: bf16[2,4,32,8], index: 8, kind: input, shape index: {}]   ;;  %s3919_s9 = inlined_call_operand.vmem [shape: f32[2,4,1,8], index: 9, kind: input, shape index: {}]   ;;  %s3920_s10 = inlined_call_operand.vmem [shape: bf16[2,32,32], index: 10, kind: input, shape index: {}]   ;;  %s3921_s11 = inlined_call_operand.vmem [shape: f32[2,1,32], index: 11, kind: input, shape index: {}]   ;;  %s3922_s12 = inlined_call_operand.vmem [shape: f32[2,1,32], index: 12, kind: input, shape index: {}]   ;;  %s3923_s13 = inlined_call_operand.vmem [shape: f32[2,1,32], index: 13, kind: input, shape index: {}]   ;;  %s3924_s14 = inlined_call_operand.vmem [shape: bf16[2,32,128], index: 14, kind: input, shape index: {}]   ;;  %s3925_s15 = inlined_call_operand.vmem [shape: f32[2,1,128], index: 15, kind: input, shape index: {}]   ;;  %s3926_s16 = inlined_call_operand.vmem [shape: bf16[2,128,32], index: 16, kind: input, shape index: {}]   ;;  %s3927_s17 = inlined_call_operand.vmem [shape: f32[2,1,32], index: 17, kind: input, shape index: {}]   ;;  %s3928_s18 = inlined_call_operand.vmem [shape: f32[1,32], index: 18, kind: input, shape index: {}]   ;;  %s3929_s19 = inlined_call_operand.vmem [shape: f32[1,32], index: 19, kind: input, shape index: {}]   ;;  %s3930_s20 = inlined_call_operand.vmem [shape: bf16[32,128], index: 20, kind: input, shape index: {}]   ;;  %s3931_s21 = inlined_call_operand.vmem [shape: f32[1,128], index: 21, kind: input, shape index: {}]   ;;  %s3932_s22 = inlined_call_operand.vmem [shape: f32[2,8,128], index: 22, kind: output, shape index: {}]  }
   0x1   :  { %3941 = sst [smem:[#allocation12_spill]] %s3910_s0  ;;  %s3501_s30 = smov 0  }
   0x2   :  { %3942 = sst [smem:[#allocation13_spill]] %s3911_s1 }
   0x3   :  { %3943 = sst [smem:[#allocation14_spill]] %s3912_s2 }
   0x4   :  { %3944 = sst [smem:[#allocation15_spill]] %s3913_s3  ;;  %s3495_s3 = smov 0  }
   0x5   :  { %3945 = sst [smem:[#allocation16_spill]] %s3914_s4  ;;  %s3503_s4 = smov 0  }
   0x6   :  { %3946 = sst [smem:[#allocation17_spill]] %s3915_s5 }
   0x7   :  { %3947 = sst [smem:[#allocation18_spill]] %s3916_s6 }
   0x8   :  { %3948 = sst [smem:[#allocation19_spill]] %s3917_s7 }
   0x9   :  { %3949 = sst [smem:[#allocation20_spill]] %s3918_s8 }
   0xa   :  { %3950 = sst [smem:[#allocation21_spill]] %s3919_s9 }
   0xb   :  { %3951 = sst [smem:[#allocation22_spill]] %s3920_s10 }
   0xc   :  { %3952 = sst [smem:[#allocation23_spill]] %s3922_s12 }
   0xd   :  { %3953 = sst [smem:[#allocation24_spill]] %s3923_s13 }
   0xe   :  { %3954 = sst [smem:[#allocation25_spill]] %s3926_s16 }
   0xf   :  { %3955 = sst [smem:[#allocation26_spill]] %s3927_s17 }
  0x10   :  { %3956 = sst [smem:[#allocation27_spill]] %s3928_s18 }
  0x11   :  { %3957 = sst [smem:[#allocation28_spill]] %s3929_s19 }
  0x12   :  { %3958 = sst [smem:[#allocation29_spill]] %s3930_s20 }
  0x13   :  { %3959 = sst [smem:[#allocation30_spill]] %s3931_s21 }
  0x14   :  { %3960 = sst [smem:[#allocation31_spill]] %s3932_s22 }
  0x15 LB: > { %3961 = sst [smem:[#allocation3_spill]] %s3355_s3  ;;  %s41_s0 = sadd.s32 1, %s3363_s29  ;;  %s3371_s4 = sphi %s3503_s4, %s32_s4   ;;  %s3367_s30 = sphi %s3501_s30, %s4011_s30   ;;  %s3363_s29 = sphi %s3499_s29, %s4010_s29   ;;  %s3359_s28 = sphi %s3497_s28, %s4009_s28   ;;  %s3355_s3 = sphi %s3495_s3, %s4008_s3  }
  0x16   : > { %3962 = sst [smem:[#allocation4_spill]] %s3363_s29  ;;  %s44_s23 = sadd.s32 1, %s3367_s30 }
  0x17   : > { %3963 = sst [smem:[#allocation5_spill]] %s3367_s30  ;;  %p42_p0 = scmp.ge.s32.totalorder %s41_s0, 2 }
  0x18   : > { %3964 = sst [smem:[#allocation6_spill]] %s3371_s4  ;;  %p2856_p1 = scmp.ge.s32.totalorder %s3371_s4, 1 }
  0x19   : > { %p774_p2 = scmp.lt.s32.totalorder %s3371_s4, 5  ;;  %s4013_s0 = smov (%p42_p0, %s41_s0), 0 }
  0x1a   : > { %3965 = sst [smem:[#allocation7_spill]] %s4013_s0  ;;  %s4015_s23 = smov (!%p42_p0, %s44_s23), %s3367_s30 }
  0x1b   : > { %p775_p3 = pnand %p2856_p1, %p774_p2  ;;  %p46_p4 = scmp.ge.s32.totalorder %s4015_s23, 2 }
  0x1d   : > { %s4017_s23 = smov (%p46_p4, %s4015_s23), 0  ;;  %778 = sbr.rel (%p775_p3) target bundleno = 3005 (0xbbd), region = 108 }
  0x1e   : > { %3966 = sst [smem:[#allocation8_spill]] %s4017_s23 }
  0x24   : > { %p900_p5 = scmp.lt.s32.totalorder %s3359_s28, 1  ;;  %p907_p6 = scmp.lt.s32.totalorder %s3355_s3, 1 }
  0x25   : > { %s3969_s23 = sld [smem:[#allocation12_spill]]  ;;  %s3972_s24 = sld [smem:[#allocation16_spill]] }
  0x26   : > { %s4019_s28 = smov (!%p900_p5, %s3359_s28), 1  ;;  %s3975_s4 = sld [smem:[#allocation18_spill]] }
  0x27   : > { %3967 = sst [smem:[#allocation9_spill]] %s4019_s28  ;;  %s2857_s5 = sshll.u32 %s4019_s28, 3 }
  0x28   : > { %s3531_s1 = scalar_select %p907_p6, %s3355_s3, 1 }
  0x29   : > { %s3976_s7 = sld [smem:[#allocation19_spill]]  ;;  %s3977_s8 = sld [smem:[#allocation20_spill]] }
  0x2a   : > { %s2962_s22 = sshll.u32 %s3531_s1, 6  ;;  %s2860_s25 = sshll.u32 %s3531_s1, 2 }
  0x2b   : > { %s903_s0 = scalar_lea.vmem %s3969_s23, %s2857_s5  ;;  %s3553_s6 = scalar_lea.vmem %s3972_s24, %s2962_s22 }
  0x2c   : > { %s3973_s23 = sld [smem:[#allocation17_spill]]  ;;  %s3564_s21 = scalar_lea.vmem %s3975_s4, %s2962_s22 }
  0x2d   : > { %s3978_s9 = sld [smem:[#allocation21_spill]]  ;;  %s2965_s27 = sshll.u32 %s3531_s1, 4 }
  0x2e   : > { %s3979_s10 = sld [smem:[#allocation22_spill]]  ;;  %s3983_s18 = sld [smem:[#allocation25_spill]] }
  0x2f   : > { %s3569_s20 = scalar_lea.vmem %s3976_s7, %s2860_s25  ;;  %s3574_s24 = scalar_lea.vmem %s3977_s8, %s2962_s22 }
  0x30   : > { %s3984_s16 = sld [smem:[#allocation26_spill]]  ;;  %s3985_s3 = sld [smem:[#allocation31_spill]] }
  0x32   : > { %s3559_s26 = scalar_lea.vmem %s3973_s23, %s2860_s25 }
  0x33   : > { %3974 = sst [smem:[#allocation10_spill]] %s3559_s26  ;;  %s3579_s2 = scalar_lea.vmem %s3978_s9, %s2860_s25 }
  0x34   : > { %s3585_s30 = scalar_lea.vmem %s3979_s10, %s2965_s27  ;;  %s3602_s9 = scalar_lea.vmem %s3924_s14, %s2965_s27 }
  0x35   : > { %3980 = sst [smem:[#allocation11_spill]] %s3585_s30  ;;  %s961_s10 = scalar_lea.vmem %s3925_s15, %s3531_s1 }
  0x36   : > { %s3611_s19 = scalar_lea.vmem %s3983_s18, %s2962_s22  ;;  %s969_s12 = scalar_lea.vmem %s3984_s16, %s3531_s1 }
  0x37   : > { %s3620_s13 = scalar_lea.vmem %s3985_s3, %s2857_s5  ;;  %s3986_s27 = sld [smem:[#allocation3_spill]] }
  0x3d   : > { %p2874_p7 = scmp.ne.s32.totalorder %s3986_s27, 0 }
  0x3e   : > { %v979_v0 = vld [vmem:[%s903_s0] sm:$0xff] (!%p2874_p7)  ;;  %vm980_vm0 = vcmask (!%p2874_p7), 261120  }
  0x3f   : > { %978 = sbr.rel (%p2874_p7) target bundleno = 70 (0x46), region = 112  ;;  %981 = vst.msk [vmem:[#allocation2] sm:$0xff] (!%p2874_p7), %vm980_vm0, %v979_v0 }
  0x46 PF: > { %v3623_v1 = vld [vmem:[#allocation2] sm:$0xff]  ;;  %vm985_vm1 = vcmask 261120   ;;  %v3373_v10 = vmov 0.0   ;;  %v3275_v11 = vld [vmem:[%s3553_s6 + $0x8] sm:$0xff]   ;;  %vm3374_vm2 = vmmov 0   ;;  %s3987_s5 = sld [smem:[#allocation14_spill]]  ;;  %s3996_s17 = scalar_lea.vmem %s3921_s11, %s3531_s1 }
  0x47   : > { %v986_v2 = vsel %vm985_vm1, %v3623_v1, 0.0  ;;  %v3273_v8 = vld [vmem:[%s3553_s6] sm:$0xff]   ;;  %3038 = vmatprep.subr.bf16.mxu1 %v3373_v10  ;;  %3070 = vmatprep.subr.bf16.mxu0 %v3373_v10  ;;  %v3276_v12 = vld [vmem:[%s3564_s21 + $0x8] sm:$0xff]   ;;  %s3989_s28 = sld [smem:[#allocation15_spill]]  ;;  %v3277_v22 = vld [vmem:[%s3553_s6 + $0x10] sm:$0xff]   ;;  %vm1789_vm3 = vcmask 64512  }
  0x48   : > { %987 = vadd.xlane.f32.xlu0 %v986_v2  ;;  %v3274_v9 = vld [vmem:[%s3564_s21] sm:$0xff]   ;;  %3039 = vmatpush3.bf16.msra.mxu1 %v3273_v8  ;;  %v3279_v25 = vld [vmem:[%s3553_s6 + $0x18] sm:$0xff]   ;;  %v3280_v26 = vld [vmem:[%s3564_s21 + $0x28] sm:$0xff]   ;;  %vm2029_vm4 = vcmask 1043456   ;;  %s3993_s23 = sld [smem:[#allocation13_spill]]  ;;  %s3375_s4 = smov 16  }
  0x49   : > { %3071 = vmatpush3.bf16.msra.mxu0 %v3274_v9  ;;  %3040 = vmatprep.subr.bf16.mxu1 %v3373_v10  ;;  %v3278_v23 = vld [vmem:[%s3564_s21 + $0x20] sm:$0xff]   ;;  %v3283_v29 = vld [vmem:[%s3553_s6 + $0x28] sm:$0xff]   ;;  %v3285_v31 = vld [vmem:[%s3553_s6 + $0x30] sm:$0xff]   ;;  %s3376_s18 = smov 8   ;;  %s3377_s7 = smov 24   ;;  %vm2224_vm5 = vcmask 130048  }
  0x4a   : > { %3072 = vmatprep.subr.bf16.mxu0 %v3373_v10  ;;  %3042 = vmatprep.mubr.msk.bf16.mxu1 %vm3374_vm2, %v3373_v10  ;;  %v3281_v27 = vld [vmem:[%s3553_s6 + $0x20] sm:$0xff]   ;;  %v3284_v30 = vld [vmem:[%s3574_s24 + $0x8] sm:$0xff]   ;;  %v3287_v33 = vld [vmem:[%s3553_s6 + $0x38] sm:$0xff]   ;;  %s3992_s6 = sld [smem:[#allocation9_spill]]  ;;  %vm2226_vm6 = vcmask 195584   ;;  %s3997_s22 = sld [smem:[#allocation23_spill]] }
  0x4b   : > { %3074 = vmatprep.mubr.msk.bf16.mxu0 %vm3374_vm2, %v3373_v10  ;;  %v3282_v28 = vld [vmem:[%s3574_s24] sm:$0xff]   ;;  %v3288_v34 = vld [vmem:[%s3574_s24 + $0x28] sm:$0xff]   ;;  %v3289_v35 = vld [vmem:[%s3564_s21 + $0x10] sm:$0xff]   ;;  %s3999_s16 = sld [smem:[#allocation24_spill]] }
  0x4c   : > { %3041 = vmatpush3.bf16.msra.mxu1 %v3275_v11  ;;  %s3988_s30 = scalar_lea.vmem %s3987_s5, %s3531_s1  ;;  %v3286_v32 = vld [vmem:[%s3574_s24 + $0x20] sm:$0xff]   ;;  %v3290_v36 = vld [vmem:[%s3564_s21 + $0x18] sm:$0xff]   ;;  %v3291_v37 = vld [vmem:[%s3564_s21 + $0x30] sm:$0xff]  }
  0x4d   : > { %3073 = vmatpush3.bf16.msra.mxu0 %v3276_v12  ;;  %3046 = vmatprep.subr.bf16.mxu1 %v3373_v10  ;;  %v2875_v17 = vld [vmem:[%s3988_s30] ss:$0 sm:$0xff]  ;;  %s3990_s25 = scalar_lea.vmem %s3989_s28, %s3531_s1  ;;  %v3292_v38 = vld [vmem:[%s3564_s21 + $0x38] sm:$0xff]   ;;  %v3293_v39 = vld [vmem:[%s3574_s24 + $0x10] sm:$0xff]   ;;  %s3991_s21 = sld [smem:[#allocation10_spill]] }
  0x4e   : > { %3086 = vmatprep.subr.bf16.mxu0 %v3373_v10  ;;  %v2876_v19 = vld [vmem:[%s3990_s25] ss:$0 sm:$0xff]  ;;  %v3294_v40 = vld [vmem:[%s3574_s24 + $0x18] sm:$0xff]   ;;  %v3295_v41 = vld [vmem:[%s3574_s24 + $0x30] sm:$0xff]  }
  0x4f   : > { %v3296_v42 = vld [vmem:[%s3574_s24 + $0x38] sm:$0xff]   ;;  %v2893_v43 = vld [vmem:[%s3569_s20] ss:$0 sm:$0xff]  ;;  %v2895_v56 = vld [vmem:[%s3569_s20 + $0x2] ss:$0 sm:$0xff] }
  0x50   : > { %v2909_v8 = vld [vmem:[%s3579_s2] ss:$0 sm:$0xff]  ;;  %s3994_s29 = scalar_lea.vmem %s3993_s23, %s3992_s6  ;;  %s3998_s0 = scalar_lea.vmem %s3997_s22, %s3531_s1 }
  0x51   : > { %s4000_s3 = scalar_lea.vmem %s3999_s16, %s3531_s1 }
  0x53   : > { %v2877_v54 = vld [vmem:[%s3991_s21] ss:$0 sm:$0xff] }
  0xd5   : > { %v988_v3 = vpop.xlane.xlu0 %987 }
  0xd6   : > { %v990_v4 = vmul.f32 0.03125, %v988_v3 }
  0xd8   : > { %v991_v5 = vsub.f32 %v3623_v1, %v990_v4 }
  0xda   : > { %v992_v6 = vmul.f32 %v991_v5, %v991_v5 }
  0xdc   : > { %v993_v7 = vsel %vm985_vm1, %v992_v6, 0.0 }
  0xdd   : > { %994 = vadd.xlane.f32.xlu0 %v993_v7  ;;  %v2879_v7 = vld [vmem:[%s3991_s21 + $0x2] ss:$0 sm:$0xff] }
 0x16a   : > { %v995_v13 = vpop.xlane.xlu0 %994 }
 0x16b   : > { %v996_v14 = vmul.f32 0.03125, %v995_v13 }
 0x16d   : > { %v997_v15 = vadd.f32 1e-05, %v996_v14 }
 0x16f   : > { %3309 = vrsqrt.f32 %v997_v15 }
 0x179   : > { %v3310_v16 = vpop.eup %3309 }
 0x17a   : > { %v999_v18 = vmul.f32 %v3310_v16, %v991_v5 }
 0x17c   : > { %v1006_v20 = vmul.f32 %v2875_v17, %v999_v18 }
 0x17e   : > { %v1013_v21 = vadd.f32 %v2876_v19, %v1006_v20 }
 0x180   : > { %v3655_v24 = vpack.c.bf16 %v1013_v21, %v1013_v21 }
 0x182   : > { %3043 = vmatmul.mubr.msk.bf16.vlgmr.msra.gmra.mrb[0].mxu1 %vm985_vm1, %v3655_v24  ;;  %3075 = vmatmul.mubr.msk.bf16.vlgmr.msra.gmra.mrb[0].mxu0 %vm985_vm1, %v3655_v24 }
 0x183   : > { %3047 = vmatpush3.bf16.msra.mxu1 %v3277_v22  ;;  %3087 = vmatpush3.bf16.msra.mxu0 %v3278_v23  ;;  %v2911_v23 = vld [vmem:[%s3579_s2 + $0x2] ss:$0 sm:$0xff] }
 0x184   : > { %3048 = vmatprep.subr.bf16.mxu1 %v3373_v10  ;;  %3088 = vmatprep.subr.bf16.mxu0 %v3373_v10 }
 0x185   : > { %3050 = vmatprep.mubr.msk.bf16.mxu1 %vm3374_vm2, %v3373_v10  ;;  %3090 = vmatprep.mubr.msk.bf16.mxu0 %vm3374_vm2, %v3373_v10 }
 0x187   : > { %3049 = vmatpush3.bf16.msra.mxu1 %v3279_v25  ;;  %3089 = vmatpush3.bf16.msra.mxu0 %v3280_v26 }
 0x188   : > { %3054 = vmatprep.subr.bf16.mxu1 %v3373_v10  ;;  %3102 = vmatprep.subr.bf16.mxu0 %v3373_v10 }
 0x18a   : > { %3051 = vmatmul.mubr.msk.bf16.vlgmr.msra.gmra.mrb[4].mxu1 %vm985_vm1, %v3655_v24  ;;  %3091 = vmatmul.mubr.msk.bf16.vlgmr.msra.gmra.mrb[4].mxu0 %vm985_vm1, %v3655_v24 }
 0x18b   : > { %3055 = vmatpush3.bf16.msra.mxu1 %v3281_v27  ;;  %3103 = vmatpush3.bf16.msra.mxu0 %v3282_v28 }
 0x18c   : > { %3056 = vmatprep.subr.bf16.mxu1 %v3373_v10  ;;  %3104 = vmatprep.subr.bf16.mxu0 %v3373_v10 }
 0x18d   : > { %3058 = vmatprep.mubr.msk.bf16.mxu1 %vm3374_vm2, %v3373_v10  ;;  %3106 = vmatprep.mubr.msk.bf16.mxu0 %vm3374_vm2, %v3373_v10 }
 0x18f   : > { %3057 = vmatpush3.bf16.msra.mxu1 %v3283_v29  ;;  %3105 = vmatpush3.bf16.msra.mxu0 %v3284_v30 }
 0x190   : > { %3062 = vmatprep.subr.bf16.mxu1 %v3373_v10  ;;  %3118 = vmatprep.subr.bf16.mxu0 %v3373_v10 }
 0x192   : > { %3059 = vmatmul.mubr.msk.bf16.vlgmr.msra.gmra.mrb[8].mxu1 %vm985_vm1, %v3655_v24  ;;  %3107 = vmatmul.mubr.msk.bf16.vlgmr.msra.gmra.mrb[8].mxu0 %vm985_vm1, %v3655_v24 }
 0x193   : > { %3063 = vmatpush3.bf16.msra.mxu1 %v3285_v31  ;;  %3119 = vmatpush3.bf16.msra.mxu0 %v3286_v32 }
 0x194   : > { %3064 = vmatprep.subr.bf16.mxu1 %v3373_v10  ;;  %3120 = vmatprep.subr.bf16.mxu0 %v3373_v10 }
 0x195   : > { %3066 = vmatprep.mubr.msk.bf16.mxu1 %vm3374_vm2, %v3373_v10  ;;  %3122 = vmatprep.mubr.msk.bf16.mxu0 %vm3374_vm2, %v3373_v10 }
 0x197   : > { %3065 = vmatpush3.bf16.msra.mxu1 %v3287_v33  ;;  %3121 = vmatpush3.bf16.msra.mxu0 %v3288_v34 }
 0x198   : > { %3078 = vmatprep.subr.bf16.mxu1 %v3373_v10  ;;  %3134 = vmatprep.subr.bf16.mxu0 %v3373_v10 }
 0x19a   : > { %3067 = vmatmul.mubr.msk.bf16.vlgmr.msra.gmra.mrb[12].mxu1 %vm985_vm1, %v3655_v24  ;;  %3123 = vmatmul.mubr.msk.bf16.vlgmr.msra.gmra.mrb[12].mxu0 %vm985_vm1, %v3655_v24 }
 0x19b   : > { %3079 = vmatpush3.bf16.msra.mxu1 %v3289_v35  ;;  %3082 = vmatprep.mubr.msk.bf16.mxu1 %vm3374_vm2, %v3373_v10  ;;  %v2894_v35 = vld [vmem:[%s3569_s20 + $0x1] ss:$0 sm:$0xff] }
 0x19c   : > { %3080 = vmatprep.subr.bf16.mxu1 %v3373_v10  ;;  %3136 = vmatprep.mubr.msk.bf16.mxu0 %vm3374_vm2, %v3373_v10 }
 0x19f   : > { %3081 = vmatpush3.bf16.msra.mxu1 %v3290_v36 }
 0x1a0   : > { %3094 = vmatprep.subr.bf16.mxu1 %v3373_v10 }
 0x1a2   : > { %3083 = vmatmul.mubr.msk.bf16.vlgmr.msra.gmra.mrb[16].mxu1 %vm985_vm1, %v3655_v24 }
 0x1a3   : > { %3095 = vmatpush3.bf16.msra.mxu1 %v3291_v37  ;;  %3098 = vmatprep.mubr.msk.bf16.mxu1 %vm3374_vm2, %v3373_v10 }
 0x1a4   : > { %3096 = vmatprep.subr.bf16.mxu1 %v3373_v10 }
 0x1a7   : > { %3097 = vmatpush3.bf16.msra.mxu1 %v3292_v38 }
 0x1a8   : > { %3110 = vmatprep.subr.bf16.mxu1 %v3373_v10 }
 0x1aa   : > { %3099 = vmatmul.mubr.msk.bf16.vlgmr.msra.gmra.mrb[20].mxu1 %vm985_vm1, %v3655_v24 }
 0x1ab   : > { %3111 = vmatpush3.bf16.msra.mxu1 %v3293_v39  ;;  %3114 = vmatprep.mubr.msk.bf16.mxu1 %vm3374_vm2, %v3373_v10 }
 0x1ac   : > { %3112 = vmatprep.subr.bf16.mxu1 %v3373_v10 }
 0x1af   : > { %3113 = vmatpush3.bf16.msra.mxu1 %v3294_v40 }
 0x1b0   : > { %3126 = vmatprep.subr.bf16.mxu1 %v3373_v10 }
 0x1b2   : > { %3115 = vmatmul.mubr.msk.bf16.vlgmr.msra.gmra.mrb[24].mxu1 %vm985_vm1, %v3655_v24 }
 0x1b3   : > { %3127 = vmatpush3.bf16.msra.mxu1 %v3295_v41  ;;  %3130 = vmatprep.mubr.msk.bf16.mxu1 %vm3374_vm2, %v3373_v10 }
 0x1b4   : > { %3128 = vmatprep.subr.bf16.mxu1 %v3373_v10 }
 0x1b7   : > { %3129 = vmatpush3.bf16.msra.mxu1 %v3296_v42  ;;  %v2878_v42 = vld [vmem:[%s3991_s21 + $0x1] ss:$0 sm:$0xff] }
 0x1b8   : > { %3140 = vmatprep.subr.bf16.mxu1 %v3373_v10 }
 0x1ba   : > { %3131 = vmatmul.mubr.msk.bf16.vlgmr.msra.gmra.mrb[28].mxu1 %vm985_vm1, %v3655_v24 }
 0x1bb   : > { %3142 = vmatprep.mubr.msk.bf16.mxu1 %vm3374_vm2, %v3373_v10 }
 0x255   : > { %v1108_v44 = vpop.f32.mrb[0].mxu1  ;;  %v1360_v45 = vpop.f32.mrb[0].mxu0 }
 0x256   : > { %v1361_v46 = vadd.f32 %v2893_v43, %v1360_v45  ;;  %v3044_v47 = vpop.f32.mrb[1].mxu1  ;;  %v3076_v48 = vpop.f32.mrb[1].mxu0  ;;  %v1109_v57 = vadd.f32 %v2877_v54, %v1108_v44  ;;  %v2896_v44 = vld [vmem:[%s3569_s20 + $0x3] ss:$0 sm:$0xff] }
 0x257   : > { %v1111_v49 = vpop.f32.mrb[2].mxu1  ;;  %v1363_v50 = vpop.f32.mrb[2].mxu0 }
 0x258   : > { %v1778_v51 = vpack.c.bf16 %v1361_v46, %v1361_v46  ;;  %v3045_v52 = vpop.f32.mrb[3].mxu1  ;;  %v3077_v53 = vpop.f32.mrb[3].mxu0  ;;  %v1774_v2 = vpack.c.bf16 %v1109_v57, %v1109_v57 }
 0x259   : > { %v2880_v53 = vld [vmem:[%s3991_s21 + $0x3] ss:$0 sm:$0xff] }
 0x25a   : > { %v1794_v55 = vsel %vm1789_vm3, %v1778_v51, 0 }
 0x25b   : > { %3135 = vmatpush3.bf16.xpose.msra.mxu0 %v1794_v55  ;;  %v2910_v55 = vld [vmem:[%s3579_s2 + $0x1] ss:$0 sm:$0xff] }
 0x25c   : > { %3146 = vmatprep.subr.bf16.mxu0 %v3373_v10 }
 0x25d   : > { %v1160_v58 = vpop.f32.mrb[4].mxu1  ;;  %v1464_v59 = vpop.f32.mrb[4].mxu0 }
 0x25e   : > { %v1465_v60 = vadd.f32 %v2895_v56, %v1464_v59  ;;  %v3052_v61 = vpop.f32.mrb[5].mxu1  ;;  %v3092_v62 = vpop.f32.mrb[5].mxu0  ;;  %v1161_v45 = vadd.f32 %v2878_v42, %v1160_v58 }
 0x25f   : > { %v1163_v63 = vpop.f32.mrb[6].mxu1  ;;  %v1467_v0 = vpop.f32.mrb[6].mxu0 }
 0x260   : > { %v1780_v3 = vpack.c.bf16 %v1465_v60, %v1465_v60  ;;  %v3053_v4 = vpop.f32.mrb[7].mxu1  ;;  %v3093_v5 = vpop.f32.mrb[7].mxu0  ;;  %v1775_v50 = vpack.c.bf16 %v1161_v45, %v1161_v45 }
 0x262   : > { %v1886_v6 = vsel %vm1789_vm3, %v1780_v3, 0  ;;  %3137 = vmatmul.mubr.msk.bf16.vlgmr.msra.gmra.mrb[16].mxu0 %vm1789_vm3, %v1774_v2  ;;  %v2912_v2 = vld [vmem:[%s3579_s2 + $0x3] ss:$0 sm:$0xff]  ;;  %s3995_s2 = sld [smem:[#allocation11_spill]] }
 0x263   : > { %3147 = vmatpush3.bf16.xpose.msra.mxu0 %v1886_v6  ;;  %3148 = vmatprep.mubr.msk.bf16.mxu0 %vm3374_vm2, %v3373_v10 }
 0x264   : > { %3158 = vmatprep.subr.bf16.mxu0 %v3373_v10 }
 0x265   : > { %v1212_v9 = vpop.f32.mrb[8].mxu1  ;;  %v1612_v11 = vpop.f32.mrb[8].mxu0 }
 0x266   : > { %v1213_v12 = vadd.f32 %v2879_v7, %v1212_v9  ;;  %v1613_v13 = vadd.f32 %v2909_v8, %v1612_v11  ;;  %v3060_v14 = vpop.f32.mrb[9].mxu1  ;;  %v3108_v15 = vpop.f32.mrb[9].mxu0  ;;  %v2925_v11 = vld [vmem:[%s3994_s29] ss:$0 sm:$0xff] }
 0x267   : > { %v1215_v16 = vpop.f32.mrb[10].mxu1  ;;  %v1615_v17 = vpop.f32.mrb[10].mxu0 }
 0x268   : > { %v1776_v18 = vpack.c.bf16 %v1213_v12, %v1213_v12  ;;  %v2022_v19 = vpack.c.bf16 %v1613_v13, %v1613_v13  ;;  %v3061_v20 = vpop.f32.mrb[11].mxu1  ;;  %v3109_v21 = vpop.f32.mrb[11].mxu0 }
 0x26a   : > { %v2031_v22 = vsel %vm2029_vm4, %v2022_v19, 0  ;;  %3149 = vmatmul.mubr.msk.bf16.vlgmr.msra.gmra.mrb[20].mxu0 %vm1789_vm3, %v1776_v18 }
 0x26b   : > { %3159 = vmatpush3.bf16.msra.mxu0 %v2031_v22  ;;  %3160 = vmatprep.mubr.msk.bf16.mxu0 %vm3374_vm2, %v3373_v10 }
 0x26c   : > { %3170 = vmatprep.subr.bf16.mxu0 %v3373_v10 }
 0x26d   : > { %v1264_v24 = vpop.f32.mrb[12].mxu1  ;;  %v1716_v25 = vpop.f32.mrb[12].mxu0 }
 0x26e   : > { %v1717_v26 = vadd.f32 %v2911_v23, %v1716_v25  ;;  %v3068_v27 = vpop.f32.mrb[13].mxu1  ;;  %v3124_v28 = vpop.f32.mrb[13].mxu0  ;;  %v1265_v56 = vadd.f32 %v2880_v53, %v1264_v24 }
 0x26f   : > { %v1267_v29 = vpop.f32.mrb[14].mxu1  ;;  %v1719_v30 = vpop.f32.mrb[14].mxu0 }
 0x270   : > { %v2024_v31 = vpack.c.bf16 %v1717_v26, %v1717_v26  ;;  %v3069_v32 = vpop.f32.mrb[15].mxu1  ;;  %v3125_v33 = vpop.f32.mrb[15].mxu0  ;;  %v1777_v61 = vpack.c.bf16 %v1265_v56, %v1265_v56 }
 0x272   : > { %v3762_v34 = vsel %vm2029_vm4, %v2024_v31, 0 }
 0x275   : > { %v1412_v36 = vpop.f32.mrb[16].mxu1 }
 0x276   : > { %v1413_v37 = vadd.f32 %v2894_v35, %v1412_v36  ;;  %v3084_v38 = vpop.f32.mrb[17].mxu1 }
 0x277   : > { %v1415_v39 = vpop.f32.mrb[18].mxu1 }
 0x278   : > { %v1779_v40 = vpack.c.bf16 %v1413_v37, %v1413_v37  ;;  %v3085_v41 = vpop.f32.mrb[19].mxu1 }
 0x27a   : > { %v1840_v43 = vsel %vm1789_vm3, %v1779_v40, 0 }
 0x27b   : > { %3141 = vmatpush3.bf16.xpose.msra.mxu1 %v1840_v43 }
 0x27c   : > { %3152 = vmatprep.subr.bf16.mxu1 %v3373_v10 }
 0x27d   : > { %v1516_v46 = vpop.f32.mrb[20].mxu1 }
 0x27e   : > { %v1517_v47 = vadd.f32 %v2896_v44, %v1516_v46  ;;  %v3100_v48 = vpop.f32.mrb[21].mxu1 }
 0x27f   : > { %v1519_v49 = vpop.f32.mrb[22].mxu1 }
 0x280   : > { %v1781_v51 = vpack.c.bf16 %v1517_v47, %v1517_v47  ;;  %v3101_v52 = vpop.f32.mrb[23].mxu1 }
 0x282   : > { %v1932_v54 = vsel %vm1789_vm3, %v1781_v51, 0  ;;  %3143 = vmatmul.mubr.msk.bf16.vlgmr.msra.gmra.mrb[32].mxu1 %vm1789_vm3, %v1775_v50 }
 0x283   : > { %3153 = vmatpush3.bf16.xpose.msra.mxu1 %v1932_v54  ;;  %3154 = vmatprep.mubr.msk.bf16.mxu1 %vm3374_vm2, %v3373_v10 }
 0x284   : > { %3164 = vmatprep.subr.bf16.mxu1 %v3373_v10 }
 0x285   : > { %v1664_v57 = vpop.f32.mrb[24].mxu1 }
 0x286   : > { %v1665_v58 = vadd.f32 %v2910_v55, %v1664_v57  ;;  %v3116_v59 = vpop.f32.mrb[25].mxu1 }
 0x287   : > { %v1667_v60 = vpop.f32.mrb[26].mxu1 }
 0x288   : > { %v2023_v62 = vpack.c.bf16 %v1665_v58, %v1665_v58  ;;  %v3117_v63 = vpop.f32.mrb[27].mxu1 }
 0x28a   : > { %v2077_v0 = vsel %vm2029_vm4, %v2023_v62, 0  ;;  %3155 = vmatmul.mubr.msk.bf16.vlgmr.msra.gmra.mrb[36].mxu1 %vm1789_vm3, %v1777_v61 }
 0x28b   : > { %3165 = vmatpush3.bf16.msra.mxu1 %v2077_v0  ;;  %3166 = vmatprep.mubr.msk.bf16.mxu1 %vm3374_vm2, %v3373_v10 }
 0x28c   : > { %3176 = vmatprep.subr.bf16.mxu1 %v3373_v10 }
 0x28d   : > { %v1768_v3 = vpop.f32.mrb[28].mxu1 }
 0x28e   : > { %v1769_v4 = vadd.f32 %v2912_v2, %v1768_v3  ;;  %v3132_v5 = vpop.f32.mrb[29].mxu1 }
 0x28f   : > { %v1771_v6 = vpop.f32.mrb[30].mxu1 }
 0x290   : > { %v2025_v7 = vpack.c.bf16 %v1769_v4, %v1769_v4  ;;  %v3133_v8 = vpop.f32.mrb[31].mxu1 }
 0x292   : > { %v3783_v9 = vsel %vm2029_vm4, %v2025_v7, 0 }
 0x335   : > { %v1830_v12 = vpop.f32.mrb[16].mxu0 }
 0x336   : > { %v1831_v13 = vadd.f32 %v2925_v11, %v1830_v12  ;;  %v3138_v14 = vpop.f32.mrb[17].mxu0 }
 0x337   : > { %v1833_v15 = vpop.f32.mrb[18].mxu0 }
 0x338   : > { %v3139_v16 = vpop.f32.mrb[19].mxu0  ;;  %v1974_v17 = vsel %vm1789_vm3, %v1831_v13, -inf }
 0x339   : > { %1975 = vmax.xlane.f32.xlu1 %v1974_v17 }
 0x33d   : > { %v1922_v18 = vpop.f32.mrb[20].mxu0 }
 0x33e   : > { %v1923_v19 = vadd.f32 %v2925_v11, %v1922_v18  ;;  %v3150_v20 = vpop.f32.mrb[21].mxu0  ;;  %v3297_v18 = vld [vmem:[%s3995_s2] sm:$0xff]  }
 0x33f   : > { %v1925_v21 = vpop.f32.mrb[22].mxu0 }
 0x340   : > { %v3151_v22 = vpop.f32.mrb[23].mxu0  ;;  %v1980_v23 = vsel %vm1789_vm3, %v1923_v19, -inf }
 0x341   : > { %1981 = vmax.xlane.f32.xlu0 %v1980_v23 }
 0x355   : > { %v1876_v24 = vpop.f32.mrb[32].mxu1 }
 0x356   : > { %v1877_v25 = vadd.f32 %v2925_v11, %v1876_v24  ;;  %v3144_v26 = vpop.f32.mrb[33].mxu1 }
 0x357   : > { %v1879_v27 = vpop.f32.mrb[34].mxu1 }
 0x358   : > { %v3145_v28 = vpop.f32.mrb[35].mxu1  ;;  %v1977_v29 = vsel %vm1789_vm3, %v1877_v25, -inf }
 0x359   : > { %1978 = vmax.xlane.f32.xlu1 %v1977_v29 }
 0x35d   : > { %v1968_v30 = vpop.f32.mrb[36].mxu1 }
 0x35e   : > { %v1969_v31 = vadd.f32 %v2925_v11, %v1968_v30  ;;  %v3156_v32 = vpop.f32.mrb[37].mxu1 }
 0x35f   : > { %v1971_v33 = vpop.f32.mrb[38].mxu1 }
 0x360   : > { %v3157_v35 = vpop.f32.mrb[39].mxu1  ;;  %v1983_v36 = vsel %vm1789_vm3, %v1969_v31, -inf }
 0x361   : > { %1984 = vmax.xlane.f32.xlu1 %v1983_v36  ;;  %v2934_v36 = vld [vmem:[%s3996_s17] ss:$0 sm:$0xff] }
 0x3c6   : > { %v1976_v37 = vpop.xlane.xlu1 %1975 }
 0x3c7   : > { %v1986_v38 = vsub.f32 %v1831_v13, %v1976_v37 }
 0x3c9   : > { %v1990_v39 = vmul.f32 1.442695, %v1986_v38 }
 0x3cb   : > { %3311 = vpow2.f32 %v1990_v39 }
 0x3ce   : > { %v1982_v40 = vpop.xlane.xlu0 %1981 }
 0x3cf   : > { %v1988_v41 = vsub.f32 %v1923_v19, %v1982_v40  ;;  %v3298_v19 = vld [vmem:[%s3995_s2 + $0x8] sm:$0xff]  }
 0x3d1   : > { %v1994_v42 = vmul.f32 1.442695, %v1988_v41 }
 0x3d3   : > { %3313 = vpow2.f32 %v1994_v42 }
 0x3d5   : > { %v3312_v43 = vpop.eup %3311 }
 0x3d6   : > { %v1998_v44 = vsel %vm1789_vm3, %v3312_v43, 0.0 }
 0x3d7   : > { %1999 = vadd.xlane.f32.xlu0 %v1998_v44 }
 0x3dd   : > { %v3314_v45 = vpop.eup %3313 }
 0x3de   : > { %v2004_v46 = vsel %vm1789_vm3, %v3314_v45, 0.0 }
 0x3df   : > { %2005 = vadd.xlane.f32.xlu0 %v2004_v46 }
 0x3e6   : > { %v1979_v47 = vpop.xlane.xlu1 %1978 }
 0x3e7   : > { %v1987_v48 = vsub.f32 %v1877_v25, %v1979_v47 }
 0x3e9   : > { %v1992_v49 = vmul.f32 1.442695, %v1987_v48 }
 0x3eb   : > { %3315 = vpow2.f32 %v1992_v49  ;;  %v3299_v49 = vld [vmem:[%s3602_s9] sm:$0xff]  }
 0x3ee   : > { %v1985_v50 = vpop.xlane.xlu1 %1984 }
 0x3ef   : > { %v1989_v51 = vsub.f32 %v1969_v31, %v1985_v50  ;;  %v3301_v50 = vld [vmem:[%s3611_s19] sm:$0xff]  }
 0x3f1   : > { %v1996_v52 = vmul.f32 1.442695, %v1989_v51  ;;  %v3302_v51 = vld [vmem:[%s3611_s19 + $0x8] sm:$0xff]  }
 0x3f3   : > { %3317 = vpow2.f32 %v1996_v52  ;;  %v3303_v52 = vld [vmem:[%s3611_s19 + $0x10] sm:$0xff]  }
 0x3f5   : > { %v3316_v53 = vpop.eup %3315 }
 0x3f6   : > { %v2001_v54 = vsel %vm1789_vm3, %v3316_v53, 0.0 }
 0x3f7   : > { %2002 = vadd.xlane.f32.xlu1 %v2001_v54  ;;  %v3305_v54 = vld [vmem:[%s3611_s19 + $0x20] sm:$0xff]  }
 0x3fd   : > { %v3318_v55 = vpop.eup %3317 }
 0x3fe   : > { %v2007_v56 = vsel %vm1789_vm3, %v3318_v55, 0.0 }
 0x3ff   : > { %2008 = vadd.xlane.f32.xlu1 %v2007_v56 }
 0x464   : > { %v2000_v57 = vpop.xlane.xlu0 %1999 }
 0x465   : > { %3319 = vrcp.f32 %v2000_v57 }
 0x46c   : > { %v2006_v58 = vpop.xlane.xlu0 %2005 }
 0x46d   : > { %3321 = vrcp.f32 %v2006_v58 }
 0x46f   : > { %v3320_v59 = vpop.eup %3319 }
 0x470   : > { %v2014_v60 = vmul.f32 %v3320_v59, %v3312_v43 }
 0x472   : > { %v2018_v61 = vpack.c.bf16 %v2014_v60, %v2014_v60  ;;  %v2938_v60 = vld [vmem:[%s3998_s0] ss:$0 sm:$0xff] }
 0x474   : > { %3161 = vmatmul.mubr.msk.bf16.vlgmr.msra.gmra.mrb[24].mxu0 %vm1789_vm3, %v2018_v61 }
 0x475   : > { %3171 = vmatpush3.bf16.msra.mxu0 %v3762_v34  ;;  %3172 = vmatprep.mubr.msk.bf16.mxu0 %vm3374_vm2, %v3373_v10 }
 0x476   : > { %3182 = vmatprep.subr.bf16.mxu0 %v3373_v10 }
 0x477   : > { %v3322_v62 = vpop.eup %3321 }
 0x478   : > { %v2016_v63 = vmul.f32 %v3322_v62, %v3314_v45  ;;  %v2939_v62 = vld [vmem:[%s4000_s3] ss:$0 sm:$0xff] }
 0x47a   : > { %v2020_v0 = vpack.c.bf16 %v2016_v63, %v2016_v63 }
 0x47c   : > { %3173 = vmatmul.mubr.msk.bf16.vlgmr.msra.gmra.mrb[28].mxu0 %vm1789_vm3, %v2020_v0 }
 0x47d   : > { %3186 = vmatprep.mubr.msk.bf16.mxu0 %vm3374_vm2, %v3373_v10  ;;  %3183 = vmatpush3.bf16.msra.mxu0 %v3297_v18 }
 0x47e   : > { %3184 = vmatprep.subr.bf16.mxu0 %v3373_v10 }
 0x481   : > { %3185 = vmatpush3.bf16.msra.mxu0 %v3298_v19 }
 0x482   : > { %3198 = vmatprep.subr.bf16.mxu0 %v3373_v10 }
 0x484   : > { %v2003_v2 = vpop.xlane.xlu1 %2002 }
 0x485   : > { %3323 = vrcp.f32 %v2003_v2 }
 0x48c   : > { %v2009_v3 = vpop.xlane.xlu1 %2008 }
 0x48d   : > { %3325 = vrcp.f32 %v2009_v3  ;;  %v3307_v3 = vld [vmem:[%s3611_s19 + $0x30] sm:$0xff]  }
 0x48f   : > { %v3324_v4 = vpop.eup %3323 }
 0x490   : > { %v2015_v5 = vmul.f32 %v3324_v4, %v3316_v53  ;;  %v3304_v53 = vld [vmem:[%s3611_s19 + $0x18] sm:$0xff]  }
 0x491   : > { %v3308_v4 = vld [vmem:[%s3611_s19 + $0x38] sm:$0xff]  }
 0x492   : > { %v2019_v34 = vpack.c.bf16 %v2015_v5, %v2015_v5  ;;  %v2940_v5 = vld [vmem:[%s961_s10] ss:$0 sm:$0xff]  ;;  %s4002_s10 = sld [smem:[#allocation3_spill]] }
 0x494   : > { %3167 = vmatmul.mubr.msk.bf16.vlgmr.msra.gmra.mrb[40].mxu1 %vm1789_vm3, %v2019_v34 }
 0x495   : > { %3177 = vmatpush3.bf16.msra.mxu1 %v3783_v9  ;;  %3178 = vmatprep.mubr.msk.bf16.mxu1 %vm3374_vm2, %v3373_v10 }
 0x496   : > { %3190 = vmatprep.subr.bf16.mxu1 %v3373_v10 }
 0x497   : > { %v3326_v6 = vpop.eup %3325 }
 0x498   : > { %v2017_v7 = vmul.f32 %v3326_v6, %v3318_v55  ;;  %v3306_v55 = vld [vmem:[%s3611_s19 + $0x28] sm:$0xff]   ;;  %p2953_p8 = scmp.ne.s32.totalorder %s4002_s10, 1 }
 0x499   : > { %s4003_s19 = sld [smem:[#allocation29_spill]] (!%p2953_p8)  ;;  %vm3379_vm7 = vmmov (!%p2953_p8), 0   ;;  %s4005_s26 = sld [smem:[#allocation28_spill]] (!%p2953_p8) }
 0x49a   : > { %v2021_v8 = vpack.c.bf16 %v2017_v7, %v2017_v7 }
 0x49c   : > { %3179 = vmatmul.mubr.msk.bf16.vlgmr.msra.gmra.mrb[44].mxu1 %vm1789_vm3, %v2021_v8 }
 0x49d   : > { %3194 = vmatprep.mubr.msk.bf16.mxu1 %vm3374_vm2, %v3373_v10  ;;  %3191 = vmatpush3.bf16.msra.mxu1 %v3299_v49 }
 0x49e   : > { %3192 = vmatprep.subr.bf16.mxu1 %v3373_v10 }
 0x547   : > { %v2067_v11 = vpop.f32.mrb[24].mxu0 }
 0x548   : > { %v3162_v12 = vpop.f32.mrb[25].mxu0 }
 0x549   : > { %v2070_v13 = vpop.f32.mrb[26].mxu0 }
 0x54a   : > { %v3163_v14 = vpop.f32.mrb[27].mxu0 }
 0x54f   : > { %v2159_v9 = vpop.f32.mrb[28].mxu0 }
 0x550   : > { %v3174_v15 = vpop.f32.mrb[29].mxu0  ;;  %2216 = vrot.lane.b32.xlu1 %v2159_v9, %s3375_s4  ;;  %s4004_s4 = sld [smem:[#allocation27_spill]] (!%p2953_p8) }
 0x551   : > { %v2162_v16 = vpop.f32.mrb[30].mxu0 }
 0x552   : > { %v3175_v17 = vpop.f32.mrb[31].mxu0 }
 0x567   : > { %v2113_v20 = vpop.f32.mrb[40].mxu1 }
 0x568   : > { %2212 = vrot.lane.b32.xlu0 %v2113_v20, %s3376_s18  ;;  %v3168_v21 = vpop.f32.mrb[41].mxu1 }
 0x569   : > { %v2116_v22 = vpop.f32.mrb[42].mxu1 }
 0x56a   : > { %v3169_v23 = vpop.f32.mrb[43].mxu1 }
 0x56f   : > { %v2205_v24 = vpop.f32.mrb[44].mxu1 }
 0x570   : > { %2220 = vrot.lane.b32.xlu1 %v2205_v24, %s3377_s7  ;;  %v3180_v25 = vpop.f32.mrb[45].mxu1 }
 0x571   : > { %v2208_v26 = vpop.f32.mrb[46].mxu1  ;;  %v3329_v25 = vld [vmem:[%s4003_s19] sm:$0xff] (!%p2953_p8)  }
 0x572   : > { %v3181_v27 = vpop.f32.mrb[47].mxu1  ;;  %v3378_v26 = vmov (!%p2953_p8), 0.0  }
 0x573   : > { %v3330_v27 = vld [vmem:[%s4003_s19 + $0x8] sm:$0xff] (!%p2953_p8)  }
 0x5c2   : > { %v2217_v29 = vpop.permute.xlu1 %2216 }
 0x5da   : > { %v2213_v28 = vpop.permute.xlu0 %2212 }
 0x5db   : > { %v2223_v30 = vsel %vm1789_vm3, %v2067_v11, %v2213_v28 }
 0x5dc   : > { %v2225_v31 = vsel %vm2224_vm5, %v2223_v30, %v2217_v29 }
 0x5e2   : > { %v2221_v32 = vpop.permute.xlu1 %2220 }
 0x5e3   : > { %v2227_v33 = vsel %vm2226_vm6, %v2225_v31, %v2221_v32  ;;  %v2954_v32 = vld [vmem:[%s4004_s4] ss:$0 sm:$0xff] (!%p2953_p8) }
 0x5e4   : > { %v2228_v35 = vpack.c.bf16 %v2227_v33, %v2227_v33 }
 0x5e6   : > { %3187 = vmatmul.mubr.msk.bf16.vlgmr.msra.gmra.mrb[32].mxu0 %vm985_vm1, %v2228_v35  ;;  %v2955_v35 = vld [vmem:[%s4005_s26] ss:$0 sm:$0xff] (!%p2953_p8) }
 0x5e7   : > { %3214 = vmatprep.mubr.msk.bf16.mxu0 %vm3374_vm2, %v3373_v10  ;;  %3199 = vmatpush3.bf16.msra.mxu0 %v3301_v50 }
 0x5e8   : > { %3200 = vmatprep.subr.bf16.mxu0 %v3373_v10 }
 0x5eb   : > { %3201 = vmatpush3.bf16.msra.mxu0 %v3302_v51 }
 0x5ec   : > { %3202 = vmatprep.subr.bf16.mxu0 %v3373_v10 }
 0x5ef   : > { %3203 = vmatpush3.bf16.msra.mxu0 %v3303_v52 }
 0x5f0   : > { %3204 = vmatprep.subr.bf16.mxu0 %v3373_v10 }
 0x5f3   : > { %3205 = vmatpush3.bf16.msra.mxu0 %v3304_v53 }
 0x5f4   : > { %3206 = vmatprep.subr.bf16.mxu0 %v3373_v10 }
 0x5f7   : > { %3207 = vmatpush3.bf16.msra.mxu0 %v3305_v54 }
 0x5f8   : > { %3208 = vmatprep.subr.bf16.mxu0 %v3373_v10 }
 0x5fb   : > { %3209 = vmatpush3.bf16.msra.mxu0 %v3306_v55 }
 0x5fc   : > { %3210 = vmatprep.subr.bf16.mxu0 %v3373_v10 }
 0x5ff   : > { %3211 = vmatpush3.bf16.msra.mxu0 %v3307_v3 }
 0x600   : > { %3212 = vmatprep.subr.bf16.mxu0 %v3373_v10  ;;  %v2944_v10 = vld [vmem:[%s969_s12] ss:$0 sm:$0xff] }
 0x603   : > { %3213 = vmatpush3.bf16.msra.mxu0 %v3308_v4 }
 0x604   : > { %3218 = vmatprep.subr.bf16.mxu0 (!%p2953_p8), %v3378_v26 }
 0x6b9   : > { %v2289_v37 = vpop.f32.mrb[32].mxu0 }
 0x6ba   : > { %v2290_v38 = vadd.f32 %v2934_v36, %v2289_v37  ;;  %v3188_v39 = vpop.f32.mrb[33].mxu0 }
 0x6bb   : > { %v2292_v40 = vpop.f32.mrb[34].mxu0 }
 0x6bc   : > { %v3828_v41 = vadd.f32 %v2290_v38, %v3623_v1  ;;  %v3189_v42 = vpop.f32.mrb[35].mxu0  ;;  %v3300_v1 = vld [vmem:[%s3602_s9 + $0x8] sm:$0xff]   ;;  %s4006_s9 = sld [smem:[#allocation30_spill]] (!%p2953_p8) }
 0x6bd   : > { %3193 = vmatpush3.bf16.msra.mxu1 %v3300_v1 }
 0x6be   : > { %v2298_v43 = vsel %vm985_vm1, %v3828_v41, 0.0 }
 0x6bf   : > { %2299 = vadd.xlane.f32.xlu1 %v2298_v43 }
 0x6c2   : > { %v2956_v39 = vld [vmem:[%s4006_s9] ss:$0 sm:$0xff] (!%p2953_p8) }
 0x74c   : > { %v2300_v44 = vpop.xlane.xlu1 %2299 }
 0x74d   : > { %v2301_v45 = vmul.f32 0.03125, %v2300_v44 }
 0x74f   : > { %v2302_v46 = vsub.f32 %v3828_v41, %v2301_v45 }
 0x751   : > { %v2303_v47 = vmul.f32 %v2302_v46, %v2302_v46 }
 0x753   : > { %v2304_v48 = vsel %vm985_vm1, %v2303_v47, 0.0 }
 0x754   : > { %2305 = vadd.xlane.f32.xlu0 %v2304_v48 }
 0x7e1   : > { %v2306_v56 = vpop.xlane.xlu0 %2305 }
 0x7e2   : > { %v2307_v57 = vmul.f32 0.03125, %v2306_v56 }
 0x7e4   : > { %v2308_v58 = vadd.f32 1e-05, %v2307_v57 }
 0x7e6   : > { %3327 = vrsqrt.f32 %v2308_v58 }
 0x7f0   : > { %v3328_v59 = vpop.eup %3327 }
 0x7f1   : > { %v2310_v61 = vmul.f32 %v3328_v59, %v2302_v46 }
 0x7f3   : > { %v2317_v63 = vmul.f32 %v2938_v60, %v2310_v61 }
 0x7f5   : > { %v2324_v0 = vadd.f32 %v2939_v62, %v2317_v63 }
 0x7f7   : > { %v2325_v2 = vpack.c.bf16 %v2324_v0, %v2324_v0 }
 0x7f9   : > { %3195 = vmatmul.mubr.msk.bf16.vlgmr.msra.gmra.mrb[48].mxu1 %vm985_vm1, %v2325_v2 }
 0x8cc   : > { %v2386_v34 = vpop.f32.mrb[48].mxu1 }
 0x8cd   : > { %v2387_v6 = vadd.f32 %v2940_v5, %v2386_v34  ;;  %v3196_v7 = vpop.f32.mrb[49].mxu1 }
 0x8ce   : > { %v2389_v8 = vpop.f32.mrb[50].mxu1 }
 0x8cf   : > { %v2392_v11 = vmax.f32 %v2387_v6, 0.0  ;;  %v3197_v12 = vpop.f32.mrb[51].mxu1 }
 0x8d1   : > { %v2393_v13 = vpack.c.bf16 %v2392_v11, %v2392_v11 }
 0x8d3   : > { %3215 = vmatmul.mubr.bf16.vlgmr.msra.gmra.mrb[36].mxu0 %v2393_v13 }
 0x8d4   : > { %3222 = vmatprep.mubr.msk.bf16.mxu0 (!%p2953_p8), %vm3379_vm7, %v3378_v26  ;;  %3219 = vmatpush3.bf16.msra.mxu0 (!%p2953_p8), %v3329_v25 }
 0x8d5   : > { %3220 = vmatprep.subr.bf16.mxu0 (!%p2953_p8), %v3378_v26 }
 0x8d8   : > { %3221 = vmatpush3.bf16.msra.mxu0 (!%p2953_p8), %v3330_v27 }
 0x9a5   : > { %2510 = sbr.rel (%p2953_p8) target bundleno = 3005 (0xbbd), region = 116 }
 0x9a6   : > { %v2499_v14 = vpop.f32.mrb[36].mxu0 }
 0x9a7   : > { %v2500_v9 = vadd.f32 %v2944_v10, %v2499_v14  ;;  %v3216_v15 = vpop.f32.mrb[37].mxu0 }
 0x9a8   : > { %v2502_v16 = vpop.f32.mrb[38].mxu0 }
 0x9a9   : > { %v2505_v17 = vadd.f32 %v2500_v9, %v3828_v41  ;;  %v3217_v18 = vpop.f32.mrb[39].mxu0 }
 0x9ab   : > { %2506 = vst.msk [vmem:[#allocation2] sm:$0xff] %vm985_vm1, %v2505_v17  ;;  %v2513_v19 = vsel (!%p2953_p8), %vm985_vm1, %v2505_v17, 0.0 }
 0x9ac   : > { %2514 = vadd.xlane.f32.xlu0 %v2513_v19 }
 0xa39   : > { %v2515_v20 = vpop.xlane.xlu0 %2514 }
 0xa3a   : > { %v2516_v21 = vmul.f32 0.03125, %v2515_v20 }
 0xa3c   : > { %v2517_v22 = vsub.f32 %v2505_v17, %v2516_v21 }
 0xa3e   : > { %v2518_v23 = vmul.f32 %v2517_v22, %v2517_v22 }
 0xa40   : > { %v2519_v24 = vsel %vm985_vm1, %v2518_v23, 0.0 }
 0xa41   : > { %2520 = vadd.xlane.f32.xlu0 %v2519_v24 }
 0xace   : > { %v2521_v28 = vpop.xlane.xlu0 %2520 }
 0xacf   : > { %v2522_v29 = vmul.f32 0.03125, %v2521_v28 }
 0xad1   : > { %v2523_v30 = vadd.f32 1e-05, %v2522_v29 }
 0xad3   : > { %3331 = vrsqrt.f32 %v2523_v30 }
 0xadd   : > { %v3332_v31 = vpop.eup %3331 }
 0xade   : > { %v2525_v33 = vmul.f32 %v3332_v31, %v2517_v22 }
 0xae0   : > { %v2532_v36 = vmul.f32 %v2954_v32, %v2525_v33 }
 0xae2   : > { %v2539_v37 = vadd.f32 %v2955_v35, %v2532_v36 }
 0xae4   : > { %v2540_v38 = vpack.c.bf16 %v2539_v37, %v2539_v37 }
 0xae6   : > { %3223 = vmatmul.mubr.msk.bf16.vlgmr.msra.gmra.mrb[0].mxu0 %vm985_vm1, %v2540_v38 }
 0xbb9   : > { %v2601_v40 = vpop.f32.mrb[0].mxu0 }
 0xbba   : > { %v2602_v41 = vadd.f32 %v2956_v39, %v2601_v40  ;;  %v3224_v42 = vpop.f32.mrb[1].mxu0 }
 0xbbb   : > { %v2604_v43 = vpop.f32.mrb[2].mxu0 }
 0xbbc   : > { %2607 = vst [vmem:[%s3620_s13] sm:$0xff] %v2602_v41  ;;  %v3225_v44 = vpop.f32.mrb[3].mxu0 }
 0xbbd PF: > { %s4007_s27 = sld [smem:[#allocation6_spill]]  ;;  %s4008_s3 = sld [smem:[#allocation4_spill]] }
 0xbbe   : > { %s4009_s28 = sld [smem:[#allocation5_spill]]  ;;  %s4010_s29 = sld [smem:[#allocation7_spill]] }
 0xbbf   : > { %s4011_s30 = sld [smem:[#allocation8_spill]] }
 0xbc3   : > { %s32_s4 = sadd.s32 1, %s4007_s27  }
 0xbc4   : > { %p29_p9 = scmp.ge.s32.totalorder %s32_s4, 6  }
 0xbc6   :  { %31 = sbr.rel (!%p29_p9) target bundleno = 21 (0x15), region = 197 }

</bundles_post_ra>
